<compile_context>
chip_gen: v7x
topology: tpu7x:2x2x1
jax: 0.10.0
libtpu: 0.0.40
codegen_flags: <defaults>
</compile_context>

<pallas_src>
import jax
import jax.numpy as jnp
from jax.experimental import pallas as pl
from jax.experimental.pallas import tpu as pltpu

ROW_TILE = 8  # output image rows processed per in-kernel step


def _round_up(x, m):
    return ((x + m - 1) // m) * m


def sscd_forward(x, params):
    """x: [B, C, H, W] float32 in (-1, 1). Returns [B, n_classes] probabilities."""
    w1, b1, w2, b2 = params            # w1: [F, C, 3, 3], w2: [F, n_classes]
    B, C, H, W = x.shape
    F = w1.shape[0]
    F_pad = _round_up(F, 128)          # lane-dense feature dim
    Wp = W + 2                         # padded image width
    rt = min(ROW_TILE, H)              # rows per in-kernel tile

    # --- wrapper-side prep (cheap, O(input size); no 9x im2col in HBM) -----
    # Zero-pad the image (SAME conv), flatten the spatial dims row-major and
    # pad the flat axis to a 128 multiple (and by >= 2 extra zeros so the
    # shifted reads of the bottom row tile stay in bounds; the seam lanes are
    # masked out inside the kernel).
    flat_len = (H + 2) * Wp
    flat_pad = _round_up(flat_len + 2, 128)
    xp = jnp.pad(x, ((0, 0), (0, 0), (1, 1), (1, 1)))          # [B, C, H+2, Wp]
    xflat = xp.reshape(B, C, flat_len)
    xflat = jnp.pad(xflat, ((0, 0), (0, 0), (0, flat_pad - flat_len)))
    xflat = xflat.astype(jnp.bfloat16)

    # Conv weight as [F_pad, 9*C] with column order k = (i*3 + j)*C + c.
    # Rows >= F are exactly zero so padded features stay 0 through ReLU/pool.
    w_mat = w1.transpose(0, 2, 3, 1).reshape(F, 9 * C)
    w_pad = jnp.zeros((F_pad, 9 * C), jnp.bfloat16).at[:F].set(
        w_mat.astype(jnp.bfloat16))
    b_pad = jnp.zeros((F_pad, 1), jnp.float32).at[:F, 0].set(
        b1.astype(jnp.float32))

    # Column-validity mask over one row tile of pseudo-pixels: a row tile is
    # th*Wp lanes; lanes with (lane % Wp) >= W are padded-seam columns that
    # must not contribute to the pooled sum.
    col = jnp.arange(rt * Wp) % Wp
    col_mask = (col < W).astype(jnp.float32).reshape(1, rt * Wp)

    # --- fused conv + bias + ReLU + global-average-pool kernel -------------
    def conv_relu_pool_kernel(xflat_ref, w_ref, b_ref, mask_ref, pooled_ref):
        w = w_ref[...]                 # (F_pad, 9C) bf16, resident across grid
        b = b_ref[...]                 # (F_pad, 1)  f32
        mask = mask_ref[...]           # (1, rt*Wp)  f32
        pooled = jnp.zeros((F_pad, 1), jnp.float32)
        for r0 in range(0, H, rt):     # static row-tile loop (keeps VMEM small)
            th = min(rt, H - r0)
            n = th * Wp                # pseudo-pixels (lanes) in this tile
            acc = jnp.zeros((F_pad, n), jnp.float32)
            # im2col fused in VMEM: 9 shifted accumulating bf16 matmuls.
            for i in range(3):
                for j in range(3):
                    t = i * 3 + j
                    s = (r0 + i) * Wp + j
                    chunk = xflat_ref[0, :, s:s + n]          # (C, n) bf16
                    acc = acc + jnp.dot(w[:, t * C:(t + 1) * C], chunk,
                                        preferred_element_type=jnp.float32)
            y = jnp.maximum(acc + b, 0.0) * mask[:, :n]       # bias+ReLU+mask
            pooled = pooled + jnp.sum(y, axis=1, keepdims=True)
        # Divide by the true pixel count (not the padded one).
        pooled_ref[...] = (pooled * (1.0 / (H * W))).reshape(1, F_pad, 1)

    flops = 2 * B * H * W * 9 * C * F_pad
    bytes_accessed = int(B * C * flat_pad * 2 + F_pad * 9 * C * 2
                         + F_pad * 4 + rt * Wp * 4 + B * F_pad * 4)

    pooled = pl.pallas_call(
        conv_relu_pool_kernel,
        out_shape=jax.ShapeDtypeStruct((B, F_pad, 1), jnp.float32),
        grid=(B,),
        in_specs=[
            pl.BlockSpec((1, C, flat_pad), lambda b: (b, 0, 0)),
            pl.BlockSpec((F_pad, 9 * C), lambda b: (0, 0)),   # weights resident
            pl.BlockSpec((F_pad, 1), lambda b: (0, 0)),
            pl.BlockSpec((1, rt * Wp), lambda b: (0, 0)),
        ],
        out_specs=pl.BlockSpec((1, F_pad, 1), lambda b: (b, 0, 0)),
        compiler_params=pltpu.CompilerParams(
            dimension_semantics=("parallel",),          # 2 TCs on v7x
            vmem_limit_bytes=32 * 1024 * 1024),
        cost_estimate=pl.CostEstimate(flops=flops, transcendentals=0,
                                      bytes_accessed=bytes_accessed),
    )(xflat, w_pad, b_pad, col_mask)

    # --- tiny 2-class head + softmax in plain JAX (per perf review) --------
    pooled = pooled[:, :F, 0]                      # (B, F) f32
    logits = pooled @ w2 + b2
    return jax.nn.softmax(logits, axis=-1)


def init_params(key, C, F, n_classes):
    """Deterministic synthetic parameters (no checkpoint load)."""
    k1, k2, k3, k4 = jax.random.split(key, 4)
    w1 = 0.1 * jax.random.normal(k1, (F, C, 3, 3), jnp.float32)
    b1 = 0.01 * jax.random.normal(k2, (F,), jnp.float32)
    w2 = 0.1 * jax.random.normal(k3, (F, n_classes), jnp.float32)
    b2 = 0.01 * jax.random.normal(k4, (n_classes,), jnp.float32)
    return w1, b1, w2, b2


# ---------------------------------------------------------------------------
# Pure-JAX reference (f32) for a sanity check
# ---------------------------------------------------------------------------
def reference_forward(x, params):
    w1, b1, w2, b2 = params
    feat = jax.lax.conv_general_dilated(
        x, w1, window_strides=(1, 1), padding="SAME",
        dimension_numbers=("NCHW", "OIHW", "NCHW"))
    feat = jnp.maximum(feat + b1[None, :, None, None], 0.0)
    pooled = feat.mean(axis=(2, 3))
    logits = pooled @ w2 + b2
    return jax.nn.softmax(logits, axis=-1)


if __name__ == "__main__":
    B, C, H, W = 2, 4, 16, 16       # small stand-in for the 3x224x224 input
    F, n_classes = 8, 2

    key = jax.random.PRNGKey(0)
    kx, kp = jax.random.split(key)
    # image scaled to (-1, 1), NCHW
    x = jax.random.uniform(kx, (B, C, H, W), jnp.float32, minval=-1.0, maxval=1.0)
    params = init_params(kp, C, F, n_classes)

    fwd = jax.jit(sscd_forward)
    probs = jax.block_until_ready(fwd(x, params))
    ref = reference_forward(x, params)

    assert probs.shape == (B, n_classes)
    assert jnp.allclose(jnp.sum(probs, axis=-1), 1.0, atol=1e-5)
    # bf16 conv operands vs f32 reference -> loose tolerance.
    assert jnp.allclose(probs, ref, atol=2e-2, rtol=2e-2), (probs, ref)
    print("KERNEL_OK")
</pallas_src>

<mosaic_0001>
module attributes {stable_mosaic.version = 11 : i64} {
  func.func @conv_relu_pool_kernel(%arg0: i32, %arg1: memref<1x4x384xbf16, #tpu.memory_space<vmem>>, %arg2: memref<128x36xbf16, #tpu.memory_space<vmem>>, %arg3: memref<128x1xf32, #tpu.memory_space<vmem>>, %arg4: memref<1x144xf32, #tpu.memory_space<vmem>>, %arg5: memref<1x128x1xf32, #tpu.memory_space<vmem>>) attributes {dimension_semantics = [#tpu.dimension_semantics<parallel>], iteration_bounds = array<i64: 2>, scalar_prefetch = 0 : i64, scratch_operands = 0 : i64, tpu.core_type = #tpu.core_type<tc>, window_params = [{transform_indices = @transform_0, window_bounds = array<i64: 1, 4, 384>}, {pipeline_mode = #tpu.pipeline_mode<synchronous>, transform_indices = @transform_1, window_bounds = array<i64: 128, 36>}, {pipeline_mode = #tpu.pipeline_mode<synchronous>, transform_indices = @transform_2, window_bounds = array<i64: 128, 1>}, {pipeline_mode = #tpu.pipeline_mode<synchronous>, transform_indices = @transform_3, window_bounds = array<i64: 1, 144>}, {transform_indices = @transform_4, window_bounds = array<i64: 1, 128, 1>}]} {
    %c0 = arith.constant 0 : index
    %c0_0 = arith.constant 0 : index
    %0 = vector.load %arg2[%c0, %c0_0] : memref<128x36xbf16, #tpu.memory_space<vmem>>, vector<128x36xbf16>
    %c0_1 = arith.constant 0 : index
    %c0_2 = arith.constant 0 : index
    %1 = vector.load %arg3[%c0_1, %c0_2] : memref<128x1xf32, #tpu.memory_space<vmem>>, vector<128x1xf32>
    %c0_3 = arith.constant 0 : index
    %c0_4 = arith.constant 0 : index
    %2 = vector.load %arg4[%c0_3, %c0_4] : memref<1x144xf32, #tpu.memory_space<vmem>>, vector<1x144xf32>
    %cst = arith.constant 0.000000e+00 : f32
    %3 = vector.broadcast %cst : f32 to vector<128x1xf32>
    %cst_5 = arith.constant 0.000000e+00 : f32
    %4 = vector.broadcast %cst_5 : f32 to vector<128x144xf32>
    %c0_6 = arith.constant 0 : index
    %c0_7 = arith.constant 0 : index
    %c0_8 = arith.constant 0 : index
    %5 = vector.load %arg1[%c0_6, %c0_7, %c0_8] : memref<1x4x384xbf16, #tpu.memory_space<vmem>>, vector<1x4x144xbf16>
    %6 = vector.shape_cast %5 : vector<1x4x144xbf16> to vector<4x144xbf16>
    %7 = vector.extract_strided_slice %0 {offsets = [0, 0], sizes = [128, 4], strides = [1, 1]} : vector<128x36xbf16> to vector<128x4xbf16>
    %cst_9 = arith.constant dense<0.000000e+00> : vector<128x144xf32>
    %8 = tpu.matmul %7, %6, %cst_9 {dimension_numbers = #tpu.dot_dimension_numbers<[1], [0], [0], [1], [0, 0, 1, 1], [], []>} : vector<128x4xbf16>, vector<4x144xbf16>, vector<128x144xf32> -> vector<128x144xf32>
    %9 = arith.addf %4, %8 : vector<128x144xf32>
    %c0_10 = arith.constant 0 : index
    %c0_11 = arith.constant 0 : index
    %c1 = arith.constant 1 : index
    %10 = vector.load %arg1[%c0_10, %c0_11, %c1] : memref<1x4x384xbf16, #tpu.memory_space<vmem>>, vector<1x4x144xbf16>
    %11 = vector.shape_cast %10 : vector<1x4x144xbf16> to vector<4x144xbf16>
    %12 = vector.extract_strided_slice %0 {offsets = [0, 4], sizes = [128, 4], strides = [1, 1]} : vector<128x36xbf16> to vector<128x4xbf16>
    %cst_12 = arith.constant dense<0.000000e+00> : vector<128x144xf32>
    %13 = tpu.matmul %12, %11, %cst_12 {dimension_numbers = #tpu.dot_dimension_numbers<[1], [0], [0], [1], [0, 0, 1, 1], [], []>} : vector<128x4xbf16>, vector<4x144xbf16>, vector<128x144xf32> -> vector<128x144xf32>
    %14 = arith.addf %9, %13 : vector<128x144xf32>
    %c0_13 = arith.constant 0 : index
    %c0_14 = arith.constant 0 : index
    %c2 = arith.constant 2 : index
    %15 = vector.load %arg1[%c0_13, %c0_14, %c2] : memref<1x4x384xbf16, #tpu.memory_space<vmem>>, vector<1x4x144xbf16>
    %16 = vector.shape_cast %15 : vector<1x4x144xbf16> to vector<4x144xbf16>
    %17 = vector.extract_strided_slice %0 {offsets = [0, 8], sizes = [128, 4], strides = [1, 1]} : vector<128x36xbf16> to vector<128x4xbf16>
    %cst_15 = arith.constant dense<0.000000e+00> : vector<128x144xf32>
    %18 = tpu.matmul %17, %16, %cst_15 {dimension_numbers = #tpu.dot_dimension_numbers<[1], [0], [0], [1], [0, 0, 1, 1], [], []>} : vector<128x4xbf16>, vector<4x144xbf16>, vector<128x144xf32> -> vector<128x144xf32>
    %19 = arith.addf %14, %18 : vector<128x144xf32>
    %c0_16 = arith.constant 0 : index
    %c0_17 = arith.constant 0 : index
    %c18 = arith.constant 18 : index
    %20 = vector.load %arg1[%c0_16, %c0_17, %c18] : memref<1x4x384xbf16, #tpu.memory_space<vmem>>, vector<1x4x144xbf16>
    %21 = vector.shape_cast %20 : vector<1x4x144xbf16> to vector<4x144xbf16>
    %22 = vector.extract_strided_slice %0 {offsets = [0, 12], sizes = [128, 4], strides = [1, 1]} : vector<128x36xbf16> to vector<128x4xbf16>
    %cst_18 = arith.constant dense<0.000000e+00> : vector<128x144xf32>
    %23 = tpu.matmul %22, %21, %cst_18 {dimension_numbers = #tpu.dot_dimension_numbers<[1], [0], [0], [1], [0, 0, 1, 1], [], []>} : vector<128x4xbf16>, vector<4x144xbf16>, vector<128x144xf32> -> vector<128x144xf32>
    %24 = arith.addf %19, %23 : vector<128x144xf32>
    %c0_19 = arith.constant 0 : index
    %c0_20 = arith.constant 0 : index
    %c19 = arith.constant 19 : index
    %25 = vector.load %arg1[%c0_19, %c0_20, %c19] : memref<1x4x384xbf16, #tpu.memory_space<vmem>>, vector<1x4x144xbf16>
    %26 = vector.shape_cast %25 : vector<1x4x144xbf16> to vector<4x144xbf16>
    %27 = vector.extract_strided_slice %0 {offsets = [0, 16], sizes = [128, 4], strides = [1, 1]} : vector<128x36xbf16> to vector<128x4xbf16>
    %cst_21 = arith.constant dense<0.000000e+00> : vector<128x144xf32>
    %28 = tpu.matmul %27, %26, %cst_21 {dimension_numbers = #tpu.dot_dimension_numbers<[1], [0], [0], [1], [0, 0, 1, 1], [], []>} : vector<128x4xbf16>, vector<4x144xbf16>, vector<128x144xf32> -> vector<128x144xf32>
    %29 = arith.addf %24, %28 : vector<128x144xf32>
    %c0_22 = arith.constant 0 : index
    %c0_23 = arith.constant 0 : index
    %c20 = arith.constant 20 : index
    %30 = vector.load %arg1[%c0_22, %c0_23, %c20] : memref<1x4x384xbf16, #tpu.memory_space<vmem>>, vector<1x4x144xbf16>
    %31 = vector.shape_cast %30 : vector<1x4x144xbf16> to vector<4x144xbf16>
    %32 = vector.extract_strided_slice %0 {offsets = [0, 20], sizes = [128, 4], strides = [1, 1]} : vector<128x36xbf16> to vector<128x4xbf16>
    %cst_24 = arith.constant dense<0.000000e+00> : vector<128x144xf32>
    %33 = tpu.matmul %32, %31, %cst_24 {dimension_numbers = #tpu.dot_dimension_numbers<[1], [0], [0], [1], [0, 0, 1, 1], [], []>} : vector<128x4xbf16>, vector<4x144xbf16>, vector<128x144xf32> -> vector<128x144xf32>
    %34 = arith.addf %29, %33 : vector<128x144xf32>
    %c0_25 = arith.constant 0 : index
    %c0_26 = arith.constant 0 : index
    %c36 = arith.constant 36 : index
    %35 = vector.load %arg1[%c0_25, %c0_26, %c36] : memref<1x4x384xbf16, #tpu.memory_space<vmem>>, vector<1x4x144xbf16>
    %36 = vector.shape_cast %35 : vector<1x4x144xbf16> to vector<4x144xbf16>
    %37 = vector.extract_strided_slice %0 {offsets = [0, 24], sizes = [128, 4], strides = [1, 1]} : vector<128x36xbf16> to vector<128x4xbf16>
    %cst_27 = arith.constant dense<0.000000e+00> : vector<128x144xf32>
    %38 = tpu.matmul %37, %36, %cst_27 {dimension_numbers = #tpu.dot_dimension_numbers<[1], [0], [0], [1], [0, 0, 1, 1], [], []>} : vector<128x4xbf16>, vector<4x144xbf16>, vector<128x144xf32> -> vector<128x144xf32>
    %39 = arith.addf %34, %38 : vector<128x144xf32>
    %c0_28 = arith.constant 0 : index
    %c0_29 = arith.constant 0 : index
    %c37 = arith.constant 37 : index
    %40 = vector.load %arg1[%c0_28, %c0_29, %c37] : memref<1x4x384xbf16, #tpu.memory_space<vmem>>, vector<1x4x144xbf16>
    %41 = vector.shape_cast %40 : vector<1x4x144xbf16> to vector<4x144xbf16>
    %42 = vector.extract_strided_slice %0 {offsets = [0, 28], sizes = [128, 4], strides = [1, 1]} : vector<128x36xbf16> to vector<128x4xbf16>
    %cst_30 = arith.constant dense<0.000000e+00> : vector<128x144xf32>
    %43 = tpu.matmul %42, %41, %cst_30 {dimension_numbers = #tpu.dot_dimension_numbers<[1], [0], [0], [1], [0, 0, 1, 1], [], []>} : vector<128x4xbf16>, vector<4x144xbf16>, vector<128x144xf32> -> vector<128x144xf32>
    %44 = arith.addf %39, %43 : vector<128x144xf32>
    %c0_31 = arith.constant 0 : index
    %c0_32 = arith.constant 0 : index
    %c38 = arith.constant 38 : index
    %45 = vector.load %arg1[%c0_31, %c0_32, %c38] : memref<1x4x384xbf16, #tpu.memory_space<vmem>>, vector<1x4x144xbf16>
    %46 = vector.shape_cast %45 : vector<1x4x144xbf16> to vector<4x144xbf16>
    %47 = vector.extract_strided_slice %0 {offsets = [0, 32], sizes = [128, 4], strides = [1, 1]} : vector<128x36xbf16> to vector<128x4xbf16>
    %cst_33 = arith.constant dense<0.000000e+00> : vector<128x144xf32>
    %48 = tpu.matmul %47, %46, %cst_33 {dimension_numbers = #tpu.dot_dimension_numbers<[1], [0], [0], [1], [0, 0, 1, 1], [], []>} : vector<128x4xbf16>, vector<4x144xbf16>, vector<128x144xf32> -> vector<128x144xf32>
    %49 = arith.addf %44, %48 : vector<128x144xf32>
    %50 = vector.broadcast %1 : vector<128x1xf32> to vector<128x144xf32>
    %51 = arith.addf %49, %50 : vector<128x144xf32>
    %cst_34 = arith.constant 0.000000e+00 : f32
    %52 = vector.broadcast %cst_34 : f32 to vector<128x144xf32>
    %53 = arith.maximumf %51, %52 : vector<128x144xf32>
    %54 = vector.broadcast %2 : vector<1x144xf32> to vector<128x144xf32>
    %55 = arith.mulf %53, %54 : vector<128x144xf32>
    %cst_35 = arith.constant dense<0.000000e+00> : vector<128xf32>
    %56 = vector.multi_reduction <add>, %55, %cst_35 [1] : vector<128x144xf32> to vector<128xf32>
    %57 = vector.shape_cast %56 : vector<128xf32> to vector<128x1xf32>
    %58 = arith.addf %3, %57 : vector<128x1xf32>
    %cst_36 = arith.constant 0.000000e+00 : f32
    %59 = vector.broadcast %cst_36 : f32 to vector<128x144xf32>
    %c0_37 = arith.constant 0 : index
    %c0_38 = arith.constant 0 : index
    %c144 = arith.constant 144 : index
    %60 = vector.load %arg1[%c0_37, %c0_38, %c144] : memref<1x4x384xbf16, #tpu.memory_space<vmem>>, vector<1x4x144xbf16>
    %61 = vector.shape_cast %60 : vector<1x4x144xbf16> to vector<4x144xbf16>
    %62 = vector.extract_strided_slice %0 {offsets = [0, 0], sizes = [128, 4], strides = [1, 1]} : vector<128x36xbf16> to vector<128x4xbf16>
    %cst_39 = arith.constant dense<0.000000e+00> : vector<128x144xf32>
    %63 = tpu.matmul %62, %61, %cst_39 {dimension_numbers = #tpu.dot_dimension_numbers<[1], [0], [0], [1], [0, 0, 1, 1], [], []>} : vector<128x4xbf16>, vector<4x144xbf16>, vector<128x144xf32> -> vector<128x144xf32>
    %64 = arith.addf %59, %63 : vector<128x144xf32>
    %c0_40 = arith.constant 0 : index
    %c0_41 = arith.constant 0 : index
    %c145 = arith.constant 145 : index
    %65 = vector.load %arg1[%c0_40, %c0_41, %c145] : memref<1x4x384xbf16, #tpu.memory_space<vmem>>, vector<1x4x144xbf16>
    %66 = vector.shape_cast %65 : vector<1x4x144xbf16> to vector<4x144xbf16>
    %67 = vector.extract_strided_slice %0 {offsets = [0, 4], sizes = [128, 4], strides = [1, 1]} : vector<128x36xbf16> to vector<128x4xbf16>
    %cst_42 = arith.constant dense<0.000000e+00> : vector<128x144xf32>
    %68 = tpu.matmul %67, %66, %cst_42 {dimension_numbers = #tpu.dot_dimension_numbers<[1], [0], [0], [1], [0, 0, 1, 1], [], []>} : vector<128x4xbf16>, vector<4x144xbf16>, vector<128x144xf32> -> vector<128x144xf32>
    %69 = arith.addf %64, %68 : vector<128x144xf32>
    %c0_43 = arith.constant 0 : index
    %c0_44 = arith.constant 0 : index
    %c146 = arith.constant 146 : index
    %70 = vector.load %arg1[%c0_43, %c0_44, %c146] : memref<1x4x384xbf16, #tpu.memory_space<vmem>>, vector<1x4x144xbf16>
    %71 = vector.shape_cast %70 : vector<1x4x144xbf16> to vector<4x144xbf16>
    %72 = vector.extract_strided_slice %0 {offsets = [0, 8], sizes = [128, 4], strides = [1, 1]} : vector<128x36xbf16> to vector<128x4xbf16>
    %cst_45 = arith.constant dense<0.000000e+00> : vector<128x144xf32>
    %73 = tpu.matmul %72, %71, %cst_45 {dimension_numbers = #tpu.dot_dimension_numbers<[1], [0], [0], [1], [0, 0, 1, 1], [], []>} : vector<128x4xbf16>, vector<4x144xbf16>, vector<128x144xf32> -> vector<128x144xf32>
    %74 = arith.addf %69, %73 : vector<128x144xf32>
    %c0_46 = arith.constant 0 : index
    %c0_47 = arith.constant 0 : index
    %c162 = arith.constant 162 : index
    %75 = vector.load %arg1[%c0_46, %c0_47, %c162] : memref<1x4x384xbf16, #tpu.memory_space<vmem>>, vector<1x4x144xbf16>
    %76 = vector.shape_cast %75 : vector<1x4x144xbf16> to vector<4x144xbf16>
    %77 = vector.extract_strided_slice %0 {offsets = [0, 12], sizes = [128, 4], strides = [1, 1]} : vector<128x36xbf16> to vector<128x4xbf16>
    %cst_48 = arith.constant dense<0.000000e+00> : vector<128x144xf32>
    %78 = tpu.matmul %77, %76, %cst_48 {dimension_numbers = #tpu.dot_dimension_numbers<[1], [0], [0], [1], [0, 0, 1, 1], [], []>} : vector<128x4xbf16>, vector<4x144xbf16>, vector<128x144xf32> -> vector<128x144xf32>
    %79 = arith.addf %74, %78 : vector<128x144xf32>
    %c0_49 = arith.constant 0 : index
    %c0_50 = arith.constant 0 : index
    %c163 = arith.constant 163 : index
    %80 = vector.load %arg1[%c0_49, %c0_50, %c163] : memref<1x4x384xbf16, #tpu.memory_space<vmem>>, vector<1x4x144xbf16>
    %81 = vector.shape_cast %80 : vector<1x4x144xbf16> to vector<4x144xbf16>
    %82 = vector.extract_strided_slice %0 {offsets = [0, 16], sizes = [128, 4], strides = [1, 1]} : vector<128x36xbf16> to vector<128x4xbf16>
    %cst_51 = arith.constant dense<0.000000e+00> : vector<128x144xf32>
    %83 = tpu.matmul %82, %81, %cst_51 {dimension_numbers = #tpu.dot_dimension_numbers<[1], [0], [0], [1], [0, 0, 1, 1], [], []>} : vector<128x4xbf16>, vector<4x144xbf16>, vector<128x144xf32> -> vector<128x144xf32>
    %84 = arith.addf %79, %83 : vector<128x144xf32>
    %c0_52 = arith.constant 0 : index
    %c0_53 = arith.constant 0 : index
    %c164 = arith.constant 164 : index
    %85 = vector.load %arg1[%c0_52, %c0_53, %c164] : memref<1x4x384xbf16, #tpu.memory_space<vmem>>, vector<1x4x144xbf16>
    %86 = vector.shape_cast %85 : vector<1x4x144xbf16> to vector<4x144xbf16>
    %87 = vector.extract_strided_slice %0 {offsets = [0, 20], sizes = [128, 4], strides = [1, 1]} : vector<128x36xbf16> to vector<128x4xbf16>
    %cst_54 = arith.constant dense<0.000000e+00> : vector<128x144xf32>
    %88 = tpu.matmul %87, %86, %cst_54 {dimension_numbers = #tpu.dot_dimension_numbers<[1], [0], [0], [1], [0, 0, 1, 1], [], []>} : vector<128x4xbf16>, vector<4x144xbf16>, vector<128x144xf32> -> vector<128x144xf32>
    %89 = arith.addf %84, %88 : vector<128x144xf32>
    %c0_55 = arith.constant 0 : index
    %c0_56 = arith.constant 0 : index
    %c180 = arith.constant 180 : index
    %90 = vector.load %arg1[%c0_55, %c0_56, %c180] : memref<1x4x384xbf16, #tpu.memory_space<vmem>>, vector<1x4x144xbf16>
    %91 = vector.shape_cast %90 : vector<1x4x144xbf16> to vector<4x144xbf16>
    %92 = vector.extract_strided_slice %0 {offsets = [0, 24], sizes = [128, 4], strides = [1, 1]} : vector<128x36xbf16> to vector<128x4xbf16>
    %cst_57 = arith.constant dense<0.000000e+00> : vector<128x144xf32>
    %93 = tpu.matmul %92, %91, %cst_57 {dimension_numbers = #tpu.dot_dimension_numbers<[1], [0], [0], [1], [0, 0, 1, 1], [], []>} : vector<128x4xbf16>, vector<4x144xbf16>, vector<128x144xf32> -> vector<128x144xf32>
    %94 = arith.addf %89, %93 : vector<128x144xf32>
    %c0_58 = arith.constant 0 : index
    %c0_59 = arith.constant 0 : index
    %c181 = arith.constant 181 : index
    %95 = vector.load %arg1[%c0_58, %c0_59, %c181] : memref<1x4x384xbf16, #tpu.memory_space<vmem>>, vector<1x4x144xbf16>
    %96 = vector.shape_cast %95 : vector<1x4x144xbf16> to vector<4x144xbf16>
    %97 = vector.extract_strided_slice %0 {offsets = [0, 28], sizes = [128, 4], strides = [1, 1]} : vector<128x36xbf16> to vector<128x4xbf16>
    %cst_60 = arith.constant dense<0.000000e+00> : vector<128x144xf32>
    %98 = tpu.matmul %97, %96, %cst_60 {dimension_numbers = #tpu.dot_dimension_numbers<[1], [0], [0], [1], [0, 0, 1, 1], [], []>} : vector<128x4xbf16>, vector<4x144xbf16>, vector<128x144xf32> -> vector<128x144xf32>
    %99 = arith.addf %94, %98 : vector<128x144xf32>
    %c0_61 = arith.constant 0 : index
    %c0_62 = arith.constant 0 : index
    %c182 = arith.constant 182 : index
    %100 = vector.load %arg1[%c0_61, %c0_62, %c182] : memref<1x4x384xbf16, #tpu.memory_space<vmem>>, vector<1x4x144xbf16>
    %101 = vector.shape_cast %100 : vector<1x4x144xbf16> to vector<4x144xbf16>
    %102 = vector.extract_strided_slice %0 {offsets = [0, 32], sizes = [128, 4], strides = [1, 1]} : vector<128x36xbf16> to vector<128x4xbf16>
    %cst_63 = arith.constant dense<0.000000e+00> : vector<128x144xf32>
    %103 = tpu.matmul %102, %101, %cst_63 {dimension_numbers = #tpu.dot_dimension_numbers<[1], [0], [0], [1], [0, 0, 1, 1], [], []>} : vector<128x4xbf16>, vector<4x144xbf16>, vector<128x144xf32> -> vector<128x144xf32>
    %104 = arith.addf %99, %103 : vector<128x144xf32>
    %105 = vector.broadcast %1 : vector<128x1xf32> to vector<128x144xf32>
    %106 = arith.addf %104, %105 : vector<128x144xf32>
    %cst_64 = arith.constant 0.000000e+00 : f32
    %107 = vector.broadcast %cst_64 : f32 to vector<128x144xf32>
    %108 = arith.maximumf %106, %107 : vector<128x144xf32>
    %109 = vector.broadcast %2 : vector<1x144xf32> to vector<128x144xf32>
    %110 = arith.mulf %108, %109 : vector<128x144xf32>
    %cst_65 = arith.constant dense<0.000000e+00> : vector<128xf32>
    %111 = vector.multi_reduction <add>, %110, %cst_65 [1] : vector<128x144xf32> to vector<128xf32>
    %112 = vector.shape_cast %111 : vector<128xf32> to vector<128x1xf32>
    %113 = arith.addf %58, %112 : vector<128x1xf32>
    %cst_66 = arith.constant 3.906250e-03 : f32
    %114 = vector.broadcast %cst_66 : f32 to vector<128x1xf32>
    %115 = arith.mulf %113, %114 : vector<128x1xf32>
    %116 = vector.shape_cast %115 : vector<128x1xf32> to vector<1x128x1xf32>
    %c0_67 = arith.constant 0 : index
    %c0_68 = arith.constant 0 : index
    %c0_69 = arith.constant 0 : index
    %117 = vector.load %arg5[%c0_67, %c0_68, %c0_69] : memref<1x128x1xf32, #tpu.memory_space<vmem>>, vector<1x128x1xf32>
    tpu.vector_store %arg5[%c0_67, %c0_68, %c0_69], %116 {strides = array<i32>} : memref<1x128x1xf32, #tpu.memory_space<vmem>>, vector<1x128x1xf32>,
    return
  }
  func.func @transform_0(%arg0: i32) -> (i32, i32, i32) {
    %c0_i32 = arith.constant 0 : i32
    %c0_i32_0 = arith.constant 0 : i32
    %c0_i32_1 = arith.constant 0 : i32
    return %arg0, %c0_i32, %c0_i32_0 : i32, i32, i32
  }
  func.func @transform_1(%arg0: i32) -> (i32, i32) {
    %c0_i32 = arith.constant 0 : i32
    %c0_i32_0 = arith.constant 0 : i32
    %c0_i32_1 = arith.constant 0 : i32
    return %c0_i32, %c0_i32_0 : i32, i32
  }
  func.func @transform_2(%arg0: i32) -> (i32, i32) {
    %c0_i32 = arith.constant 0 : i32
    %c0_i32_0 = arith.constant 0 : i32
    %c0_i32_1 = arith.constant 0 : i32
    return %c0_i32, %c0_i32_0 : i32, i32
  }
  func.func @transform_3(%arg0: i32) -> (i32, i32) {
    %c0_i32 = arith.constant 0 : i32
    %c0_i32_0 = arith.constant 0 : i32
    %c0_i32_1 = arith.constant 0 : i32
    return %c0_i32, %c0_i32_0 : i32, i32
  }
  func.func @transform_4(%arg0: i32) -> (i32, i32, i32) {
    %c0_i32 = arith.constant 0 : i32
    %c0_i32_0 = arith.constant 0 : i32
    %c0_i32_1 = arith.constant 0 : i32
    return %arg0, %c0_i32, %c0_i32_0 : i32, i32, i32
  }
}

</mosaic_0001>

<bundles_post_ra>
// kernel: sscd_forward.1
= control target key start
LH: loop header
LB: loop body
LE: loop exit
PB: predicated region body
PF: predicated region fallthrough
CT: control target
= control target key end

     0   :  { %s4805_s15 = smov 0   ;;  %s5655_s0 = inlined_call_operand.vmem [shape: bf16[2,4,384], index: 0, kind: input, shape index: {}]   ;;  %s5656_s1 = inlined_call_operand.vmem [shape: bf16[128,36], index: 1, kind: input, shape index: {}]   ;;  %s5657_s2 = inlined_call_operand.vmem [shape: f32[128,1], index: 2, kind: input, shape index: {}]   ;;  %s5658_s3 = inlined_call_operand.vmem [shape: f32[1,144], index: 3, kind: input, shape index: {}]   ;;  %s5659_s4 = inlined_call_operand.vmem [shape: f32[2,128,1], index: 4, kind: output, shape index: {}]  }
   0x1 LB: > { %s4000_s16 = sadd.s32 4294967295, %s4756_s15   ;;  %p4004_p0 = scmp.ge.s32.totalorder %s4756_s15, 1  ;;  %s4756_s15 = sphi %s4805_s15, %s14_s15  }
   0x2   : > { %p162_p1 = scmp.lt.s32.totalorder %s4756_s15, 3 }
   0x4   : > { %p163_p2 = pnand %p4004_p0, %p162_p1 }
   0x5   : > { %p188_p3 = scmp.lt.s32.totalorder (!%p163_p2), %s4000_s16, 1  ;;  %s4758_s21 = smov (!%p163_p2), 111   ;;  %v4760_v4 = vmov (!%p163_p2), 0   ;;  %v4839_v5 = vld [vmem:[%s5656_s1 + $0x8] sm:$0xff] (!%p163_p2)   ;;  %v4846_v6 = vld [vmem:[%s5656_s1] sm:$0xff] (!%p163_p2)   ;;  %v4853_v7 = vld [vmem:[%s5656_s1 + $0x18] sm:$0xff] (!%p163_p2)  }
   0x6   : > { %166 = sbr.rel (%p163_p2) target bundleno = 1089 (0x441), region = 36  ;;  %s4759_s22 = smov (!%p163_p2), 127   ;;  %368 = vmatprep.mubr.bf16.mxu0 (!%p163_p2), %v4760_v4  ;;  %2363 = vmatprep.mubr.bf16.mxu1 (!%p163_p2), %v4760_v4  ;;  %v4859_v8 = vld [vmem:[%s5656_s1 + $0x10] sm:$0xff] (!%p163_p2)   ;;  %v4865_v9 = vld [vmem:[%s5656_s1 + $0x28] sm:$0xff] (!%p163_p2)   ;;  %v4871_v10 = vld [vmem:[%s5656_s1 + $0x20] sm:$0xff] (!%p163_p2)   ;;  %vm329_vm0 = vcmask (!%p163_p2), 1041408  }
   0x7   : > { %4740 = vset.pattern.permute.xlu0 (!%p163_p2), %v4760_v4  ;;  %4741 = vset.pattern.permute.xlu1 (!%p163_p2), %v4760_v4  ;;  %s4761_s27 = smov (!%p163_p2), 124   ;;  %v4877_v11 = vld [vmem:[%s5656_s1 + $0x38] sm:$0xff] (!%p163_p2)   ;;  %v4883_v12 = vld [vmem:[%s5656_s1 + $0x30] sm:$0xff] (!%p163_p2)   ;;  %s4762_s14 = smov (!%p163_p2), 112   ;;  %vm2323_vm1 = vcmask (!%p163_p2), 908288   ;;  %vm302_vm2 = vcmask (!%p163_p2), 1039360  }
   0x8   : > { %s4764_s18 = smov (!%p163_p2), 110   ;;  %s4765_s19 = smov (!%p163_p2), 120   ;;  %vm304_vm3 = vcmask (!%p163_p2), 31744   ;;  %vm2448_vm4 = vcmask (!%p163_p2), 916480   ;;  %vm622_vm5 = vcmask (!%p163_p2), 1031168   ;;  %vm829_vm6 = vcmask (!%p163_p2), 900096  }
   0x9   : > { %s4769_s23 = smov (!%p163_p2), 93   ;;  %s4770_s24 = smov (!%p163_p2), 108   ;;  %vm2749_vm7 = vcmask (!%p163_p2), 769024   ;;  %vm1036_vm8 = vcmask (!%p163_p2), 891904   ;;  %vm2916_vm9 = vcmask (!%p163_p2), 760832   ;;  %vm1243_vm10 = vcmask (!%p163_p2), 883712  }
   0xa   : > { %s4771_s25 = smov (!%p163_p2), 92   ;;  %s4772_s26 = smov (!%p163_p2), 76   ;;  %vm1450_vm11 = vcmask (!%p163_p2), 752640   ;;  %vm3249_vm12 = vcmask (!%p163_p2), 621568   ;;  %vm1657_vm13 = vcmask (!%p163_p2), 744448   ;;  %vm3416_vm14 = vcmask (!%p163_p2), 613376  }
   0xb   : > { %s4774_s28 = smov (!%p163_p2), 91   ;;  %s4775_s29 = smov (!%p163_p2), 75   ;;  %vm1864_vm15 = vcmask (!%p163_p2), 736256  }
   0xc   : > { %s4776_s30 = smov (!%p163_p2), 100   ;;  %s4777_s5 = smov (!%p163_p2), 90  }
   0xd   : > { %s5661_s16 = smov (!%p188_p3, %s4000_s16), 1  ;;  %s4778_s6 = smov 74  }
   0xe   : > { %s4709_s17 = smul.u32 6, %s5661_s16  ;;  %s4779_s7 = smov 96  }
  0x10   : > { %s192_s20 = scalar_lea.vmem %s5655_s0, %s4709_s17  ;;  %s4763_s17 = smov 126  }
  0x11   : > { %v4819_v0 = vld.sshfl [vmem:[%s192_s20 + $0x2] sm:$0x33 pattern:$0x76325410] }
  0x12   : > { %2319 = vrot.lane.b32.xlu1 %v4819_v0, %s4758_s21  ;;  %v4822_v1 = vld.sshfl [vmem:[%s192_s20] sm:$0x33 pattern:$0x76325410]  ;;  %v4826_v2 = vcombine.high %v4819_v0, %v4819_v0  ;;  %s4766_s20 = smov 94  }
  0x13   : > { %298 = vrot.lane.b32.xlu0 %v4822_v1, %s4759_s22  ;;  %v4831_v3 = vcombine.high %v4822_v1, %v4822_v1  ;;  %v474_v23 = vsel %vm329_vm0, %v4822_v1, 0 }
  0x16   : > { %2321 = vrot.lane.b32.xlu1 %v4826_v2, %s4758_s21  ;;  %s4767_s21 = smov 116  }
  0x17   : > { %300 = vrot.lane.b32.xlu0 %v4831_v3, %s4759_s22  ;;  %s4768_s22 = smov 109  }
  0x1a   : > { %275 = vrot.lane.b32.xlu1 %v4839_v5, %s4761_s27 }
  0x1b   : > { %273 = vrot.lane.b32.xlu0 %v4846_v6, %s4761_s27 }
  0x1e   : > { %279 = vrot.lane.b32.xlu1 %v4853_v7, %s4761_s27 }
  0x1f   : > { %277 = vrot.lane.b32.xlu0 %v4859_v8, %s4761_s27 }
  0x22   : > { %283 = vrot.lane.b32.xlu1 %v4865_v9, %s4761_s27 }
  0x23   : > { %281 = vrot.lane.b32.xlu0 %v4871_v10, %s4761_s27 }
  0x26   : > { %287 = vrot.lane.b32.xlu1 %v4877_v11, %s4761_s27 }
  0x27   : > { %285 = vrot.lane.b32.xlu0 %v4883_v12, %s4761_s27  ;;  %s4773_s27 = smov 104  }
  0x2a   : > { %2446 = vrot.lane.b32.xlu1 %v4826_v2, %s4762_s14 }
  0x2b   : > { %2444 = vrot.lane.b32.xlu0 %v4819_v0, %s4762_s14 }
  0x2e   : > { %620 = vrot.lane.b32.xlu1 %v4831_v3, %s4763_s17 }
  0x2f   : > { %618 = vrot.lane.b32.xlu0 %v4822_v1, %s4763_s17 }
  0x32   : > { %2581 = vrot.lane.b32.xlu1 %v4826_v2, %s4764_s18 }
  0x33   : > { %2579 = vrot.lane.b32.xlu0 %v4819_v0, %s4764_s18 }
  0x36   : > { %595 = vrot.lane.b32.xlu1 %v4839_v5, %s4765_s19 }
  0x37   : > { %593 = vrot.lane.b32.xlu0 %v4846_v6, %s4765_s19 }
  0x3a   : > { %599 = vrot.lane.b32.xlu1 %v4853_v7, %s4765_s19 }
  0x3b   : > { %597 = vrot.lane.b32.xlu0 %v4859_v8, %s4765_s19 }
  0x3e   : > { %603 = vrot.lane.b32.xlu1 %v4865_v9, %s4765_s19 }
  0x3f   : > { %601 = vrot.lane.b32.xlu0 %v4871_v10, %s4765_s19 }
  0x42   : > { %607 = vrot.lane.b32.xlu1 %v4877_v11, %s4765_s19 }
  0x43   : > { %605 = vrot.lane.b32.xlu0 %v4883_v12, %s4765_s19 }
  0x46   : > { %827 = vrot.lane.b32.xlu1 %v4831_v3, %s4764_s18 }
  0x47   : > { %825 = vrot.lane.b32.xlu0 %v4822_v1, %s4764_s18 }
  0x4a   : > { %2747 = vrot.lane.b32.xlu1 %v4826_v2, %s4766_s20 }
  0x4b   : > { %2745 = vrot.lane.b32.xlu0 %v4819_v0, %s4766_s20  ;;  %s4196_s20 = sshll.u32 %s5661_s16, 7 }
  0x4e   : > { %802 = vrot.lane.b32.xlu1 %v4839_v5, %s4767_s21 }
  0x4f   : > { %800 = vrot.lane.b32.xlu0 %v4846_v6, %s4767_s21 }
  0x52   : > { %806 = vrot.lane.b32.xlu1 %v4853_v7, %s4767_s21 }
  0x53   : > { %804 = vrot.lane.b32.xlu0 %v4859_v8, %s4767_s21 }
  0x56   : > { %810 = vrot.lane.b32.xlu1 %v4865_v9, %s4767_s21 }
  0x57   : > { %808 = vrot.lane.b32.xlu0 %v4871_v10, %s4767_s21 }
  0x5a   : > { %814 = vrot.lane.b32.xlu1 %v4877_v11, %s4767_s21 }
  0x5b   : > { %812 = vrot.lane.b32.xlu0 %v4883_v12, %s4767_s21 }
  0x5e   : > { %1034 = vrot.lane.b32.xlu1 %v4831_v3, %s4768_s22 }
  0x5f   : > { %1032 = vrot.lane.b32.xlu0 %v4822_v1, %s4768_s22 }
  0x62   : > { %2914 = vrot.lane.b32.xlu1 %v4826_v2, %s4769_s23 }
  0x63   : > { %2912 = vrot.lane.b32.xlu0 %v4819_v0, %s4769_s23  ;;  %s5618_s23 = scalar_lea.vmem %s5659_s4, %s4196_s20 }
  0x66   : > { %1009 = vrot.lane.b32.xlu1 %v4839_v5, %s4762_s14 }
  0x67   : > { %1007 = vrot.lane.b32.xlu0 %v4846_v6, %s4762_s14 }
  0x6a   : > { %1013 = vrot.lane.b32.xlu1 %v4853_v7, %s4762_s14 }
  0x6b   : > { %1011 = vrot.lane.b32.xlu0 %v4859_v8, %s4762_s14 }
  0x6e   : > { %1017 = vrot.lane.b32.xlu1 %v4865_v9, %s4762_s14 }
  0x6f   : > { %1015 = vrot.lane.b32.xlu0 %v4871_v10, %s4762_s14 }
  0x72   : > { %1021 = vrot.lane.b32.xlu1 %v4877_v11, %s4762_s14 }
  0x73   : > { %1019 = vrot.lane.b32.xlu0 %v4883_v12, %s4762_s14 }
  0x76   : > { %1241 = vrot.lane.b32.xlu1 %v4831_v3, %s4770_s24 }
  0x77   : > { %1239 = vrot.lane.b32.xlu0 %v4822_v1, %s4770_s24 }
  0x7a   : > { %3081 = vrot.lane.b32.xlu1 %v4826_v2, %s4771_s25 }
  0x7b   : > { %3079 = vrot.lane.b32.xlu0 %v4819_v0, %s4771_s25 }
  0x7e   : > { %1216 = vrot.lane.b32.xlu1 %v4839_v5, %s4770_s24 }
  0x7f   : > { %1214 = vrot.lane.b32.xlu0 %v4846_v6, %s4770_s24 }
  0x82   : > { %1220 = vrot.lane.b32.xlu1 %v4853_v7, %s4770_s24 }
  0x83   : > { %1218 = vrot.lane.b32.xlu0 %v4859_v8, %s4770_s24 }
  0x84   : > { %v2320_v13 = vpop.permute.xlu1 %2319 }
  0x85   : > { %v299_v14 = vpop.permute.xlu0 %298 }
  0x86   : > { %1224 = vrot.lane.b32.xlu1 %v4865_v9, %s4770_s24 }
  0x87   : > { %1222 = vrot.lane.b32.xlu0 %v4871_v10, %s4770_s24 }
  0x88   : > { %v2322_v15 = vpop.permute.xlu1 %2321 }
  0x89   : > { %v301_v16 = vpop.permute.xlu0 %300  ;;  %4106 = vmatprep.subr.msk.bf16.mxu1 %vm329_vm0, %v2322_v15  ;;  %v2324_v17 = vsel %vm2323_vm1, %v2320_v13, %v2322_v15  ;;  %vm3583_vm1 = vcmask 605184  }
  0x8a   : > { %4017 = vmatprep.subr.msk.bf16.mxu0 %vm329_vm0, %v301_v16  ;;  %v303_v18 = vsel %vm302_vm2, %v299_v14, %v301_v16  ;;  %v2326_v19 = vsel %vm329_vm0, %v2324_v17, 0  ;;  %1228 = vrot.lane.b32.xlu1 %v4877_v11, %s4770_s24  ;;  %vm3928_vm2 = vcmask 7168  }
  0x8b   : > { %v331_v20 = vsel %vm329_vm0, %v303_v18, 0  ;;  %2332 = vmatpush1.bf16.msra.mxu1 %v2326_v19  ;;  %1226 = vrot.lane.b32.xlu0 %v4883_v12, %s4770_s24 }
  0x8c   : > { %337 = vmatpush1.bf16.msra.mxu0 %v331_v20  ;;  %v276_v21 = vpop.permute.xlu1 %275 }
  0x8d   : > { %v274_v22 = vpop.permute.xlu0 %273  ;;  %4026 = vmatprep.subr.msk.bf16.mxu0 %vm329_vm0, %v4831_v3 }
  0x8e   : > { %4107 = vmatmul.mubr.msk.bf16.vlgmr.msra.gmra.mrb[0].mxu1 %vm304_vm3, %v274_v22  ;;  %1448 = vrot.lane.b32.xlu1 %v4831_v3, %s4771_s25 }
  0x8f   : > { %4018 = vmatmul.mubr.msk.bf16.vlgmr.msra.gmra.mrb[0].mxu0 %vm304_vm3, %v274_v22  ;;  %2373 = vmatprep.mubr.bf16.mxu1 %v4760_v4 }
  0x90   : > { %v280_v24 = vpop.permute.xlu1 %279  ;;  %378 = vmatprep.mubr.bf16.mxu0 %v4760_v4  ;;  %480 = vmatpush1.bf16.msra.mxu0 %v474_v23 }
  0x91   : > { %v278_v25 = vpop.permute.xlu0 %277  ;;  %1446 = vrot.lane.b32.xlu0 %v4822_v1, %s4771_s25 }
  0x92   : > { %3247 = vrot.lane.b32.xlu1 %v4826_v2, %s4772_s26 }
  0x94   : > { %v284_v26 = vpop.permute.xlu1 %283 }
  0x95   : > { %v282_v27 = vpop.permute.xlu0 %281  ;;  %3245 = vrot.lane.b32.xlu0 %v4819_v0, %s4772_s26 }
  0x96   : > { %4108 = vmatmul.mubr.msk.bf16.gmra.mrb[4].mxu1 %vm304_vm3, %v276_v21  ;;  %1423 = vrot.lane.b32.xlu1 %v4839_v5, %s4773_s27 }
  0x97   : > { %4019 = vmatmul.mubr.msk.bf16.gmra.mrb[4].mxu0 %vm304_vm3, %v276_v21  ;;  %2383 = vmatprep.mubr.bf16.mxu1 %v4760_v4 }
  0x98   : > { %v288_v28 = vpop.permute.xlu1 %287  ;;  %388 = vmatprep.mubr.bf16.mxu0 %v4760_v4 }
  0x99   : > { %v286_v29 = vpop.permute.xlu0 %285  ;;  %1421 = vrot.lane.b32.xlu0 %v4846_v6, %s4773_s27 }
  0x9a   : > { %1427 = vrot.lane.b32.xlu1 %v4853_v7, %s4773_s27 }
  0x9c   : > { %v2447_v30 = vpop.permute.xlu1 %2446 }
  0x9d   : > { %v2445_v31 = vpop.permute.xlu0 %2444  ;;  %4115 = vmatprep.subr.msk.bf16.mxu1 %vm329_vm0, %v2447_v30  ;;  %1425 = vrot.lane.b32.xlu0 %v4859_v8, %s4773_s27 }
  0x9e   : > { %v2449_v32 = vsel %vm2448_vm4, %v2445_v31, %v2447_v30  ;;  %4109 = vmatmul.mubr.msk.bf16.gmra.mrb[8].mxu1 %vm304_vm3, %v278_v25  ;;  %1431 = vrot.lane.b32.xlu1 %v4865_v9, %s4773_s27 }
  0x9f   : > { %v2451_v33 = vsel %vm329_vm0, %v2449_v32, 0  ;;  %4020 = vmatmul.mubr.msk.bf16.gmra.mrb[8].mxu0 %vm304_vm3, %v278_v25  ;;  %2393 = vmatprep.mubr.bf16.mxu1 %v4760_v4 }
  0xa0   : > { %2457 = vmatpush1.bf16.msra.mxu1 %v2451_v33  ;;  %398 = vmatprep.mubr.bf16.mxu0 %v4760_v4  ;;  %v621_v34 = vpop.permute.xlu1 %620 }
  0xa1   : > { %4036 = vmatprep.subr.msk.bf16.mxu0 %vm329_vm0, %v621_v34  ;;  %v619_v39 = vpop.permute.xlu0 %618  ;;  %1429 = vrot.lane.b32.xlu0 %v4871_v10, %s4773_s27 }
  0xa2   : > { %v623_v43 = vsel %vm622_vm5, %v619_v39, %v621_v34  ;;  %1435 = vrot.lane.b32.xlu1 %v4877_v11, %s4773_s27 }
  0xa3   : > { %v649_v45 = vsel %vm329_vm0, %v623_v43, 0 }
  0xa4   : > { %v2582_v35 = vpop.permute.xlu1 %2581 }
  0xa5   : > { %4125 = vmatprep.subr.msk.bf16.mxu1 %vm329_vm0, %v2582_v35  ;;  %v2580_v41 = vpop.permute.xlu0 %2579  ;;  %1433 = vrot.lane.b32.xlu0 %v4883_v12, %s4773_s27 }
  0xa6   : > { %4110 = vmatmul.mubr.msk.bf16.gmra.mrb[12].mxu1 %vm304_vm3, %v280_v24  ;;  %v2583_v44 = vsel %vm829_vm6, %v2580_v41, %v2582_v35  ;;  %1655 = vrot.lane.b32.xlu1 %v4831_v3, %s4774_s28 }
  0xa7   : > { %4021 = vmatmul.mubr.msk.bf16.gmra.mrb[12].mxu0 %vm304_vm3, %v280_v24  ;;  %2403 = vmatprep.mubr.bf16.mxu1 %v4760_v4  ;;  %v2585_v46 = vsel %vm329_vm0, %v2583_v44, 0 }
  0xa8   : > { %408 = vmatprep.mubr.bf16.mxu0 %v4760_v4  ;;  %v4980_v36 = vpop.permute.xlu1 %595 }
  0xa9   : > { %v594_v48 = vpop.permute.xlu0 %593  ;;  %1653 = vrot.lane.b32.xlu0 %v4822_v1, %s4774_s28 }
  0xaa   : > { %3414 = vrot.lane.b32.xlu1 %v4826_v2, %s4775_s29 }
  0xac   : > { %v4985_v37 = vpop.permute.xlu1 %599 }
  0xad   : > { %v598_v49 = vpop.permute.xlu0 %597  ;;  %3412 = vrot.lane.b32.xlu0 %v4819_v0, %s4775_s29 }
  0xae   : > { %4111 = vmatmul.mubr.msk.bf16.gmra.mrb[16].mxu1 %vm304_vm3, %v282_v27  ;;  %1630 = vrot.lane.b32.xlu1 %v4839_v5, %s4776_s30 }
  0xaf   : > { %4022 = vmatmul.mubr.msk.bf16.gmra.mrb[16].mxu0 %vm304_vm3, %v282_v27  ;;  %2413 = vmatprep.mubr.bf16.mxu1 %v4760_v4 }
  0xb0   : > { %418 = vmatprep.mubr.bf16.mxu0 %v4760_v4  ;;  %v4992_v38 = vpop.permute.xlu1 %603 }
  0xb1   : > { %v602_v51 = vpop.permute.xlu0 %601  ;;  %1628 = vrot.lane.b32.xlu0 %v4846_v6, %s4776_s30 }
  0xb2   : > { %1634 = vrot.lane.b32.xlu1 %v4853_v7, %s4776_s30 }
  0xb4   : > { %v4995_v40 = vpop.permute.xlu1 %607 }
  0xb5   : > { %v5050_v53 = vpop.permute.xlu0 %605  ;;  %1632 = vrot.lane.b32.xlu0 %v4859_v8, %s4776_s30 }
  0xb6   : > { %4112 = vmatmul.mubr.msk.bf16.gmra.mrb[20].mxu1 %vm304_vm3, %v284_v26  ;;  %1638 = vrot.lane.b32.xlu1 %v4865_v9, %s4776_s30 }
  0xb7   : > { %4023 = vmatmul.mubr.msk.bf16.gmra.mrb[20].mxu0 %vm304_vm3, %v284_v26  ;;  %2423 = vmatprep.mubr.bf16.mxu1 %v4760_v4 }
  0xb8   : > { %428 = vmatprep.mubr.bf16.mxu0 %v4760_v4  ;;  %v828_v42 = vpop.permute.xlu1 %827 }
  0xb9   : > { %v826_v55 = vpop.permute.xlu0 %825  ;;  %1636 = vrot.lane.b32.xlu0 %v4871_v10, %s4776_s30 }
  0xba   : > { %v830_v59 = vsel %vm829_vm6, %v826_v55, %v828_v42  ;;  %1642 = vrot.lane.b32.xlu1 %v4877_v11, %s4776_s30 }
  0xbb   : > { %v856_v61 = vsel %vm329_vm0, %v830_v59, 0 }
  0xbc   : > { %v2748_v47 = vpop.permute.xlu1 %2747 }
  0xbd   : > { %v2746_v57 = vpop.permute.xlu0 %2745  ;;  %1640 = vrot.lane.b32.xlu0 %v4883_v12, %s4776_s30 }
  0xbe   : > { %4113 = vmatmul.mubr.msk.bf16.gmra.mrb[24].mxu1 %vm304_vm3, %v286_v29  ;;  %v2750_v60 = vsel %vm2749_vm7, %v2746_v57, %v2748_v47  ;;  %1862 = vrot.lane.b32.xlu1 %v4831_v3, %s4777_s5 }
  0xbf   : > { %4024 = vmatmul.mubr.msk.bf16.gmra.mrb[24].mxu0 %vm304_vm3, %v286_v29  ;;  %2433 = vmatprep.mubr.bf16.mxu1 %v4760_v4  ;;  %v2752_v62 = vsel %vm329_vm0, %v2750_v60, 0 }
  0xc0   : > { %438 = vmatprep.mubr.bf16.mxu0 %v4760_v4  ;;  %v5043_v50 = vpop.permute.xlu1 %802 }
  0xc1   : > { %v801_v13 = vpop.permute.xlu0 %800  ;;  %1860 = vrot.lane.b32.xlu0 %v4822_v1, %s4777_s5 }
  0xc2   : > { %3581 = vrot.lane.b32.xlu1 %v4826_v2, %s4778_s6 }
  0xc4   : > { %v5046_v52 = vpop.permute.xlu1 %806 }
  0xc5   : > { %v805_v14 = vpop.permute.xlu0 %804  ;;  %3579 = vrot.lane.b32.xlu0 %v4819_v0, %s4778_s6 }
  0xc6   : > { %4114 = vmatmul.mubr.msk.bf16.gmra.mrb[28].mxu1 %vm304_vm3, %v288_v28  ;;  %1837 = vrot.lane.b32.xlu1 %v4839_v5, %s4779_s7 }
  0xc7   : > { %4025 = vmatmul.mubr.msk.bf16.gmra.mrb[28].mxu0 %vm304_vm3, %v288_v28  ;;  %2488 = vmatprep.mubr.bf16.mxu1 %v4760_v4 }
  0xc8   : > { %511 = vmatprep.mubr.bf16.mxu0 %v4760_v4  ;;  %v5055_v54 = vpop.permute.xlu1 %810 }
  0xc9   : > { %v809_v16 = vpop.permute.xlu0 %808  ;;  %1835 = vrot.lane.b32.xlu0 %v4846_v6, %s4779_s7 }
  0xca   : > { %1841 = vrot.lane.b32.xlu1 %v4853_v7, %s4779_s7 }
  0xcc   : > { %v5058_v56 = vpop.permute.xlu1 %814 }
  0xcd   : > { %v5125_v18 = vpop.permute.xlu0 %812  ;;  %1839 = vrot.lane.b32.xlu0 %v4859_v8, %s4779_s7 }
  0xce   : > { %4116 = vmatmul.mubr.msk.bf16.vlgmr.msra.gmra.mrb[0].mxu1 %vm304_vm3, %v4846_v6  ;;  %1845 = vrot.lane.b32.xlu1 %v4865_v9, %s4779_s7 }
  0xcf   : > { %4027 = vmatmul.mubr.msk.bf16.vlgmr.msra.gmra.mrb[0].mxu0 %vm304_vm3, %v4846_v6  ;;  %2498 = vmatprep.mubr.bf16.mxu1 %v4760_v4 }
  0xd0   : > { %521 = vmatprep.mubr.bf16.mxu0 %v4760_v4  ;;  %655 = vmatpush1.bf16.msra.mxu0 %v649_v45  ;;  %v5066_v58 = vpop.permute.xlu1 %1034 }
  0xd1   : > { %2591 = vmatpush1.bf16.msra.mxu1 %v2585_v46  ;;  %4046 = vmatprep.subr.msk.bf16.mxu0 %vm329_vm0, %v828_v42  ;;  %v1033_v20 = vpop.permute.xlu0 %1032 }
  0xd2   : > { %4135 = vmatprep.subr.msk.bf16.mxu1 %vm329_vm0, %v2748_v47  ;;  %v1037_v24 = vsel %vm1036_vm8, %v1033_v20, %v5066_v58  ;;  %1843 = vrot.lane.b32.xlu0 %v4871_v10, %s4779_s7  ;;  %v216_v20 = vld [vmem:[%s5657_s2 + $0x8] sm:$0xff] }
  0xd3   : > { %v1063_v26 = vsel %vm329_vm0, %v1037_v24, 0  ;;  %1849 = vrot.lane.b32.xlu1 %v4877_v11, %s4779_s7  ;;  %v217_v24 = vld [vmem:[%s5657_s2 + $0x10] sm:$0xff] }
  0xd4   : > { %v5074_v63 = vpop.permute.xlu1 %2914 }
  0xd5   : > { %v2913_v22 = vpop.permute.xlu0 %2912 }
  0xd6   : > { %4117 = vmatmul.mubr.msk.bf16.gmra.mrb[4].mxu1 %vm304_vm3, %v4839_v5  ;;  %v2917_v25 = vsel %vm2916_vm9, %v2913_v22, %v5074_v63  ;;  %1847 = vrot.lane.b32.xlu0 %v4883_v12, %s4779_s7  ;;  %v218_v22 = vld [vmem:[%s5657_s2 + $0x18] sm:$0xff] }
  0xd7   : > { %4028 = vmatmul.mubr.msk.bf16.gmra.mrb[4].mxu0 %vm304_vm3, %v4839_v5  ;;  %2508 = vmatprep.mubr.bf16.mxu1 %v4760_v4  ;;  %v2919_v27 = vsel %vm329_vm0, %v2917_v25, 0 }
  0xd8   : > { %531 = vmatprep.mubr.bf16.mxu0 %v4760_v4  ;;  %v5118_v15 = vpop.permute.xlu1 %1009  ;;  %2048 = vperm.xlu1 %4741, %v216_v20  }
  0xd9   : > { %v1008_v1 = vpop.permute.xlu0 %1007 }
  0xdc   : > { %v5121_v17 = vpop.permute.xlu1 %1013  ;;  %2053 = vperm.xlu1 %4741, %v217_v24  }
  0xdd   : > { %v1012_v3 = vpop.permute.xlu0 %1011 }
  0xde   : > { %4118 = vmatmul.mubr.msk.bf16.gmra.mrb[8].mxu1 %vm304_vm3, %v4859_v8 }
  0xdf   : > { %4029 = vmatmul.mubr.msk.bf16.gmra.mrb[8].mxu0 %vm304_vm3, %v4859_v8  ;;  %2518 = vmatprep.mubr.bf16.mxu1 %v4760_v4 }
  0xe0   : > { %541 = vmatprep.mubr.bf16.mxu0 %v4760_v4  ;;  %v5130_v19 = vpop.permute.xlu1 %1017 }
  0xe1   : > { %v1016_v0 = vpop.permute.xlu0 %1015 }
  0xe4   : > { %v5133_v21 = vpop.permute.xlu1 %1021 }
  0xe5   : > { %v5201_v30 = vpop.permute.xlu0 %1019 }
  0xe6   : > { %4119 = vmatmul.mubr.msk.bf16.gmra.mrb[12].mxu1 %vm304_vm3, %v4853_v7 }
  0xe7   : > { %4030 = vmatmul.mubr.msk.bf16.gmra.mrb[12].mxu0 %vm304_vm3, %v4853_v7  ;;  %2528 = vmatprep.mubr.bf16.mxu1 %v4760_v4 }
  0xe8   : > { %551 = vmatprep.mubr.bf16.mxu0 %v4760_v4  ;;  %v5141_v23 = vpop.permute.xlu1 %1241 }
  0xe9   : > { %v1240_v32 = vpop.permute.xlu0 %1239 }
  0xec   : > { %v5150_v28 = vpop.permute.xlu1 %3081 }
  0xed   : > { %v3080_v34 = vpop.permute.xlu0 %3079 }
  0xee   : > { %4120 = vmatmul.mubr.msk.bf16.gmra.mrb[16].mxu1 %vm304_vm3, %v4871_v10 }
  0xef   : > { %4031 = vmatmul.mubr.msk.bf16.gmra.mrb[16].mxu0 %vm304_vm3, %v4871_v10  ;;  %2538 = vmatprep.mubr.bf16.mxu1 %v4760_v4 }
  0xf0   : > { %561 = vmatprep.mubr.bf16.mxu0 %v4760_v4  ;;  %v5194_v2 = vpop.permute.xlu1 %1216 }
  0xf1   : > { %v1215_v5 = vpop.permute.xlu0 %1214 }
  0xf4   : > { %v5197_v29 = vpop.permute.xlu1 %1220 }
  0xf5   : > { %v1219_v6 = vpop.permute.xlu0 %1218 }
  0xf6   : > { %4121 = vmatmul.mubr.msk.bf16.gmra.mrb[20].mxu1 %vm304_vm3, %v4865_v9 }
  0xf7   : > { %4032 = vmatmul.mubr.msk.bf16.gmra.mrb[20].mxu0 %vm304_vm3, %v4865_v9  ;;  %2548 = vmatprep.mubr.bf16.mxu1 %v4760_v4 }
  0xf8   : > { %571 = vmatprep.mubr.bf16.mxu0 %v4760_v4  ;;  %v5206_v31 = vpop.permute.xlu1 %1224 }
  0xf9   : > { %v1223_v8 = vpop.permute.xlu0 %1222 }
  0xfc   : > { %v5209_v33 = vpop.permute.xlu1 %1228 }
  0xfd   : > { %v1227_v10 = vpop.permute.xlu0 %1226 }
  0xfe   : > { %4122 = vmatmul.mubr.msk.bf16.gmra.mrb[24].mxu1 %vm304_vm3, %v4883_v12 }
  0xff   : > { %4033 = vmatmul.mubr.msk.bf16.gmra.mrb[24].mxu0 %vm304_vm3, %v4883_v12  ;;  %2558 = vmatprep.mubr.bf16.mxu1 %v4760_v4 }
 0x100   : > { %581 = vmatprep.mubr.bf16.mxu0 %v4760_v4  ;;  %v5217_v35 = vpop.permute.xlu1 %1448 }
 0x103   : > { %v1447_v12 = vpop.permute.xlu0 %1446 }
 0x104   : > { %v1451_v44 = vsel %vm1450_vm11, %v1447_v12, %v5217_v35  ;;  %v231_v12 = vld [vmem:[%s5658_s3] sm:$0x3] }
 0x105   : > { %v1477_v46 = vsel %vm329_vm0, %v1451_v44, 0 }
 0x106   : > { %4123 = vmatmul.mubr.msk.bf16.gmra.mrb[28].mxu1 %vm304_vm3, %v4877_v11 }
 0x107   : > { %4034 = vmatmul.mubr.msk.bf16.gmra.mrb[28].mxu0 %vm304_vm3, %v4877_v11  ;;  %2622 = vmatprep.mubr.bf16.mxu1 %v4760_v4  ;;  %v3246_v42 = vpop.permute.xlu0 %3245 }
 0x108   : > { %686 = vmatprep.mubr.bf16.mxu0 %v4760_v4 }
 0x10e   : > { %4126 = vmatmul.mubr.msk.bf16.vlgmr.msra.gmra.mrb[0].mxu1 %vm304_vm3, %v594_v48 }
 0x10f   : > { %4037 = vmatmul.mubr.msk.bf16.vlgmr.msra.gmra.mrb[0].mxu0 %vm304_vm3, %v594_v48  ;;  %2632 = vmatprep.mubr.bf16.mxu1 %v4760_v4 }
 0x110   : > { %696 = vmatprep.mubr.bf16.mxu0 %v4760_v4  ;;  %862 = vmatpush1.bf16.msra.mxu0 %v856_v61 }
 0x111   : > { %2758 = vmatpush1.bf16.msra.mxu1 %v2752_v62  ;;  %4056 = vmatprep.subr.msk.bf16.mxu0 %vm329_vm0, %v5066_v58 }
 0x112   : > { %4145 = vmatprep.subr.msk.bf16.mxu1 %vm329_vm0, %v5074_v63 }
 0x116   : > { %4127 = vmatmul.mubr.msk.bf16.gmra.mrb[4].mxu1 %vm304_vm3, %v4980_v36 }
 0x117   : > { %4038 = vmatmul.mubr.msk.bf16.gmra.mrb[4].mxu0 %vm304_vm3, %v4980_v36  ;;  %2642 = vmatprep.mubr.bf16.mxu1 %v4760_v4  ;;  %v1244_v36 = vsel %vm1243_vm10, %v1240_v32, %v5141_v23  ;;  %v228_v32 = vld [vmem:[%s5657_s2 + $0x68] sm:$0xff] }
 0x118   : > { %706 = vmatprep.mubr.bf16.mxu0 %v4760_v4 }
 0x11e   : > { %4128 = vmatmul.mubr.msk.bf16.gmra.mrb[8].mxu1 %vm304_vm3, %v598_v49 }
 0x11f   : > { %4039 = vmatmul.mubr.msk.bf16.gmra.mrb[8].mxu0 %vm304_vm3, %v598_v49  ;;  %2652 = vmatprep.mubr.bf16.mxu1 %v4760_v4  ;;  %v1422_v49 = vpop.permute.xlu0 %1421 }
 0x120   : > { %716 = vmatprep.mubr.bf16.mxu0 %v4760_v4 }
 0x126   : > { %4129 = vmatmul.mubr.msk.bf16.gmra.mrb[12].mxu1 %vm304_vm3, %v4985_v37 }
 0x127   : > { %4040 = vmatmul.mubr.msk.bf16.gmra.mrb[12].mxu0 %vm304_vm3, %v4985_v37  ;;  %2662 = vmatprep.mubr.bf16.mxu1 %v4760_v4  ;;  %v3083_v37 = vsel %vm1450_vm11, %v3080_v34, %v5150_v28  ;;  %v230_v34 = vld [vmem:[%s5657_s2 + $0x78] sm:$0xff] }
 0x128   : > { %726 = vmatprep.mubr.bf16.mxu0 %v4760_v4  ;;  %v3085_v39 = vsel %vm329_vm0, %v3083_v37, 0 }
 0x12e   : > { %4130 = vmatmul.mubr.msk.bf16.gmra.mrb[16].mxu1 %vm304_vm3, %v602_v51 }
 0x12f   : > { %4041 = vmatmul.mubr.msk.bf16.gmra.mrb[16].mxu0 %vm304_vm3, %v602_v51  ;;  %2672 = vmatprep.mubr.bf16.mxu1 %v4760_v4 }
 0x130   : > { %736 = vmatprep.mubr.bf16.mxu0 %v4760_v4 }
 0x136   : > { %4131 = vmatmul.mubr.msk.bf16.gmra.mrb[20].mxu1 %vm304_vm3, %v4992_v38 }
 0x137   : > { %4042 = vmatmul.mubr.msk.bf16.gmra.mrb[20].mxu0 %vm304_vm3, %v4992_v38  ;;  %2682 = vmatprep.mubr.bf16.mxu1 %v4760_v4  ;;  %v1270_v38 = vsel %vm329_vm0, %v1244_v36, 0 }
 0x138   : > { %746 = vmatprep.mubr.bf16.mxu0 %v4760_v4 }
 0x13e   : > { %4132 = vmatmul.mubr.msk.bf16.gmra.mrb[24].mxu1 %vm304_vm3, %v5050_v53 }
 0x13f   : > { %4043 = vmatmul.mubr.msk.bf16.gmra.mrb[24].mxu0 %vm304_vm3, %v5050_v53  ;;  %2692 = vmatprep.mubr.bf16.mxu1 %v4760_v4 }
 0x140   : > { %756 = vmatprep.mubr.bf16.mxu0 %v4760_v4 }
 0x146   : > { %4133 = vmatmul.mubr.msk.bf16.gmra.mrb[28].mxu1 %vm304_vm3, %v4995_v40 }
 0x147   : > { %4044 = vmatmul.mubr.msk.bf16.gmra.mrb[28].mxu0 %vm304_vm3, %v4995_v40  ;;  %2789 = vmatprep.mubr.bf16.mxu1 %v4760_v4  ;;  %v3248_v40 = vpop.permute.xlu1 %3247 }
 0x148   : > { %893 = vmatprep.mubr.bf16.mxu0 %v4760_v4  ;;  %v3250_v45 = vsel %vm3249_vm12, %v3246_v42, %v3248_v40 }
 0x149   : > { %v3252_v47 = vsel %vm329_vm0, %v3250_v45, 0 }
 0x14b   : > { %v5264_v7 = vpop.permute.xlu1 %1423 }
 0x14e   : > { %4136 = vmatmul.mubr.msk.bf16.vlgmr.msra.gmra.mrb[0].mxu1 %vm304_vm3, %v801_v13 }
 0x14f   : > { %4047 = vmatmul.mubr.msk.bf16.vlgmr.msra.gmra.mrb[0].mxu0 %vm304_vm3, %v801_v13  ;;  %2799 = vmatprep.mubr.bf16.mxu1 %v4760_v4  ;;  %v5267_v9 = vpop.permute.xlu1 %1427 }
 0x150   : > { %903 = vmatprep.mubr.bf16.mxu0 %v4760_v4  ;;  %1069 = vmatpush1.bf16.msra.mxu0 %v1063_v26 }
 0x151   : > { %2925 = vmatpush1.bf16.msra.mxu1 %v2919_v27  ;;  %4066 = vmatprep.subr.msk.bf16.mxu0 %vm329_vm0, %v5141_v23 }
 0x152   : > { %4155 = vmatprep.subr.msk.bf16.mxu1 %vm329_vm0, %v5150_v28  ;;  %v220_v28 = vld [vmem:[%s5657_s2 + $0x28] sm:$0xff] }
 0x153   : > { %v5274_v11 = vpop.permute.xlu1 %1431 }
 0x156   : > { %4137 = vmatmul.mubr.msk.bf16.gmra.mrb[4].mxu1 %vm304_vm3, %v5043_v50 }
 0x157   : > { %4048 = vmatmul.mubr.msk.bf16.gmra.mrb[4].mxu0 %vm304_vm3, %v5043_v50  ;;  %2809 = vmatprep.mubr.bf16.mxu1 %v4760_v4  ;;  %v5277_v41 = vpop.permute.xlu1 %1435  ;;  %v1426_v50 = vpop.permute.xlu0 %1425 }
 0x158   : > { %913 = vmatprep.mubr.bf16.mxu0 %v4760_v4 }
 0x15b   : > { %v1656_v43 = vpop.permute.xlu1 %1655 }
 0x15e   : > { %4138 = vmatmul.mubr.msk.bf16.gmra.mrb[8].mxu1 %vm304_vm3, %v805_v14 }
 0x15f   : > { %4049 = vmatmul.mubr.msk.bf16.gmra.mrb[8].mxu0 %vm304_vm3, %v805_v14  ;;  %2819 = vmatprep.mubr.bf16.mxu1 %v4760_v4  ;;  %v3415_v48 = vpop.permute.xlu1 %3414 }
 0x160   : > { %923 = vmatprep.mubr.bf16.mxu0 %v4760_v4 }
 0x163   : > { %v5320_v51 = vpop.permute.xlu1 %1630 }
 0x166   : > { %4139 = vmatmul.mubr.msk.bf16.gmra.mrb[12].mxu1 %vm304_vm3, %v5046_v52 }
 0x167   : > { %4050 = vmatmul.mubr.msk.bf16.gmra.mrb[12].mxu0 %vm304_vm3, %v5046_v52  ;;  %2829 = vmatprep.mubr.bf16.mxu1 %v4760_v4  ;;  %v1430_v52 = vpop.permute.xlu0 %1429  ;;  %v5323_v53 = vpop.permute.xlu1 %1634 }
 0x168   : > { %933 = vmatprep.mubr.bf16.mxu0 %v4760_v4 }
 0x16b   : > { %v5328_v55 = vpop.permute.xlu1 %1638 }
 0x16e   : > { %4140 = vmatmul.mubr.msk.bf16.gmra.mrb[16].mxu1 %vm304_vm3, %v809_v16 }
 0x16f   : > { %4051 = vmatmul.mubr.msk.bf16.gmra.mrb[16].mxu0 %vm304_vm3, %v809_v16  ;;  %2839 = vmatprep.mubr.bf16.mxu1 %v4760_v4  ;;  %v5331_v57 = vpop.permute.xlu1 %1642 }
 0x170   : > { %943 = vmatprep.mubr.bf16.mxu0 %v4760_v4 }
 0x173   : > { %v1863_v59 = vpop.permute.xlu1 %1862 }
 0x176   : > { %4141 = vmatmul.mubr.msk.bf16.gmra.mrb[20].mxu1 %vm304_vm3, %v5055_v54 }
 0x177   : > { %4052 = vmatmul.mubr.msk.bf16.gmra.mrb[20].mxu0 %vm304_vm3, %v5055_v54  ;;  %2849 = vmatprep.mubr.bf16.mxu1 %v4760_v4  ;;  %v1434_v54 = vpop.permute.xlu0 %1433  ;;  %v3582_v13 = vpop.permute.xlu1 %3581 }
 0x178   : > { %953 = vmatprep.mubr.bf16.mxu0 %v4760_v4 }
 0x17b   : > { %v1838_v37 = vpop.permute.xlu1 %1837 }
 0x17e   : > { %4142 = vmatmul.mubr.msk.bf16.gmra.mrb[24].mxu1 %vm304_vm3, %v5125_v18 }
 0x17f   : > { %4053 = vmatmul.mubr.msk.bf16.gmra.mrb[24].mxu0 %vm304_vm3, %v5125_v18  ;;  %2859 = vmatprep.mubr.bf16.mxu1 %v4760_v4 }
 0x180   : > { %963 = vmatprep.mubr.bf16.mxu0 %v4760_v4 }
 0x186   : > { %4143 = vmatmul.mubr.msk.bf16.gmra.mrb[28].mxu1 %vm304_vm3, %v5058_v56 }
 0x187   : > { %4054 = vmatmul.mubr.msk.bf16.gmra.mrb[28].mxu0 %vm304_vm3, %v5058_v56  ;;  %2956 = vmatprep.mubr.bf16.mxu1 %v4760_v4  ;;  %v1654_v56 = vpop.permute.xlu0 %1653 }
 0x188   : > { %1100 = vmatprep.mubr.bf16.mxu0 %v4760_v4  ;;  %v1658_v60 = vsel %vm1657_vm13, %v1654_v56, %v1656_v43 }
 0x189   : > { %v1684_v62 = vsel %vm329_vm0, %v1658_v60, 0 }
 0x18b   : > { %v3413_v58 = vpop.permute.xlu0 %3412 }
 0x18c   : > { %v3417_v61 = vsel %vm3416_vm14, %v3413_v58, %v3415_v48 }
 0x18d   : > { %v3419_v63 = vsel %vm329_vm0, %v3417_v61, 0 }
 0x18e   : > { %4146 = vmatmul.mubr.msk.bf16.vlgmr.msra.gmra.mrb[0].mxu1 %vm304_vm3, %v1008_v1 }
 0x18f   : > { %4057 = vmatmul.mubr.msk.bf16.vlgmr.msra.gmra.mrb[0].mxu0 %vm304_vm3, %v1008_v1  ;;  %2966 = vmatprep.mubr.bf16.mxu1 %v4760_v4  ;;  %v1629_v14 = vpop.permute.xlu0 %1628  ;;  %v219_v1 = vld [vmem:[%s5657_s2 + $0x20] sm:$0xff] }
 0x190   : > { %1110 = vmatprep.mubr.bf16.mxu0 %v4760_v4  ;;  %1276 = vmatpush1.bf16.msra.mxu0 %v1270_v38 }
 0x191   : > { %3091 = vmatpush1.bf16.msra.mxu1 %v3085_v39  ;;  %4076 = vmatprep.subr.msk.bf16.mxu0 %vm329_vm0, %v5217_v35  ;;  %v229_v35 = vld [vmem:[%s5657_s2 + $0x70] sm:$0xff]  ;;  %v1842_v39 = vpop.permute.xlu1 %1841 }
 0x192   : > { %4165 = vmatprep.subr.msk.bf16.mxu1 %vm329_vm0, %v3248_v40  ;;  %2063 = vperm.xlu1 %4741, %v219_v1  }
 0x196   : > { %4147 = vmatmul.mubr.msk.bf16.gmra.mrb[4].mxu1 %vm304_vm3, %v5118_v15 }
 0x197   : > { %4058 = vmatmul.mubr.msk.bf16.gmra.mrb[4].mxu0 %vm304_vm3, %v5118_v15  ;;  %2976 = vmatprep.mubr.bf16.mxu1 %v4760_v4  ;;  %v1633_v15 = vpop.permute.xlu0 %1632 }
 0x198   : > { %1120 = vmatprep.mubr.bf16.mxu0 %v4760_v4 }
 0x19b   : > { %v5373_v16 = vpop.permute.xlu0 %1636 }
 0x19e   : > { %4148 = vmatmul.mubr.msk.bf16.gmra.mrb[8].mxu1 %vm304_vm3, %v1012_v3 }
 0x19f   : > { %4059 = vmatmul.mubr.msk.bf16.gmra.mrb[8].mxu0 %vm304_vm3, %v1012_v3  ;;  %2986 = vmatprep.mubr.bf16.mxu1 %v4760_v4  ;;  %v222_v3 = vld [vmem:[%s5657_s2 + $0x38] sm:$0xff] }
 0x1a0   : > { %1130 = vmatprep.mubr.bf16.mxu0 %v4760_v4 }
 0x1a6   : > { %4149 = vmatmul.mubr.msk.bf16.gmra.mrb[12].mxu1 %vm304_vm3, %v5121_v17 }
 0x1a7   : > { %4060 = vmatmul.mubr.msk.bf16.gmra.mrb[12].mxu0 %vm304_vm3, %v5121_v17  ;;  %2996 = vmatprep.mubr.bf16.mxu1 %v4760_v4  ;;  %v5376_v17 = vpop.permute.xlu0 %1640 }
 0x1a8   : > { %1140 = vmatprep.mubr.bf16.mxu0 %v4760_v4 }
 0x1ab   : > { %v1861_v18 = vpop.permute.xlu0 %1860 }
 0x1ac   : > { %v1865_v23 = vsel %vm1864_vm15, %v1861_v18, %v1863_v59 }
 0x1ad   : > { %v1891_v26 = vsel %vm329_vm0, %v1865_v23, 0 }
 0x1ae   : > { %4150 = vmatmul.mubr.msk.bf16.gmra.mrb[16].mxu1 %vm304_vm3, %v1016_v0 }
 0x1af   : > { %4061 = vmatmul.mubr.msk.bf16.gmra.mrb[16].mxu0 %vm304_vm3, %v1016_v0  ;;  %3006 = vmatprep.mubr.bf16.mxu1 %v4760_v4  ;;  %v224_v0 = vld [vmem:[%s5657_s2 + $0x48] sm:$0xff] }
 0x1b0   : > { %1150 = vmatprep.mubr.bf16.mxu0 %v4760_v4 }
 0x1b6   : > { %4151 = vmatmul.mubr.msk.bf16.gmra.mrb[20].mxu1 %vm304_vm3, %v5130_v19 }
 0x1b7   : > { %4062 = vmatmul.mubr.msk.bf16.gmra.mrb[20].mxu0 %vm304_vm3, %v5130_v19  ;;  %3016 = vmatprep.mubr.bf16.mxu1 %v4760_v4  ;;  %v215_v19 = vld [vmem:[%s5657_s2] sm:$0xff] }
 0x1b8   : > { %1160 = vmatprep.mubr.bf16.mxu0 %v4760_v4  ;;  %2043 = vperm.xlu0 %4740, %v215_v19  }
 0x1bc   : > { %2058 = vperm.xlu0 %4740, %v218_v22  }
 0x1be   : > { %4152 = vmatmul.mubr.msk.bf16.gmra.mrb[24].mxu1 %vm304_vm3, %v5201_v30 }
 0x1bf   : > { %4063 = vmatmul.mubr.msk.bf16.gmra.mrb[24].mxu0 %vm304_vm3, %v5201_v30  ;;  %3026 = vmatprep.mubr.bf16.mxu1 %v4760_v4  ;;  %v226_v30 = vld [vmem:[%s5657_s2 + $0x58] sm:$0xff] }
 0x1c0   : > { %1170 = vmatprep.mubr.bf16.mxu0 %v4760_v4  ;;  %2068 = vperm.xlu0 %4740, %v220_v28  }
 0x1c4   : > { %2078 = vperm.xlu0 %4740, %v222_v3  }
 0x1c6   : > { %4153 = vmatmul.mubr.msk.bf16.gmra.mrb[28].mxu1 %vm304_vm3, %v5133_v21 }
 0x1c7   : > { %4064 = vmatmul.mubr.msk.bf16.gmra.mrb[28].mxu0 %vm304_vm3, %v5133_v21  ;;  %3122 = vmatprep.mubr.bf16.mxu1 %v4760_v4  ;;  %v3580_v21 = vpop.permute.xlu0 %3579 }
 0x1c8   : > { %1307 = vmatprep.mubr.bf16.mxu0 %v4760_v4  ;;  %v3584_v25 = vsel %vm3583_vm1, %v3580_v21, %v3582_v13  ;;  %2088 = vperm.xlu0 %4740, %v224_v0  }
 0x1c9   : > { %v3586_v27 = vsel %vm329_vm0, %v3584_v25, 0 }
 0x1cb   : > { %v1836_v36 = vpop.permute.xlu0 %1835 }
 0x1cc   : > { %2098 = vperm.xlu0 %4740, %v226_v30  }
 0x1ce   : > { %4156 = vmatmul.mubr.msk.bf16.vlgmr.msra.gmra.mrb[0].mxu1 %vm304_vm3, %v1215_v5 }
 0x1cf   : > { %4067 = vmatmul.mubr.msk.bf16.vlgmr.msra.gmra.mrb[0].mxu0 %vm304_vm3, %v1215_v5  ;;  %3132 = vmatprep.mubr.bf16.mxu1 %v4760_v4  ;;  %v1840_v38 = vpop.permute.xlu0 %1839  ;;  %v1846_v5 = vpop.permute.xlu1 %1845 }
 0x1d0   : > { %1317 = vmatprep.mubr.bf16.mxu0 %v4760_v4  ;;  %1483 = vmatpush1.bf16.msra.mxu0 %v1477_v46 }
 0x1d1   : > { %3258 = vmatpush1.bf16.msra.mxu1 %v3252_v47  ;;  %4086 = vmatprep.subr.msk.bf16.mxu0 %vm329_vm0, %v1656_v43 }
 0x1d2   : > { %4175 = vmatprep.subr.msk.bf16.mxu1 %vm329_vm0, %v3415_v48  ;;  %2108 = vperm.xlu0 %4740, %v228_v32  }
 0x1d3   : > { %v1844_v40 = vpop.permute.xlu0 %1843 }
 0x1d6   : > { %4157 = vmatmul.mubr.msk.bf16.gmra.mrb[4].mxu1 %vm304_vm3, %v5194_v2  ;;  %2118 = vperm.xlu0 %4740, %v230_v34  }
 0x1d7   : > { %4068 = vmatmul.mubr.msk.bf16.gmra.mrb[4].mxu0 %vm304_vm3, %v5194_v2  ;;  %3142 = vmatprep.mubr.bf16.mxu1 %v4760_v4  ;;  %v221_v2 = vld [vmem:[%s5657_s2 + $0x30] sm:$0xff] }
 0x1d8   : > { %1327 = vmatprep.mubr.bf16.mxu0 %v4760_v4  ;;  %2073 = vperm.xlu1 %4741, %v221_v2  }
 0x1de   : > { %4158 = vmatmul.mubr.msk.bf16.gmra.mrb[8].mxu1 %vm304_vm3, %v1219_v6 }
 0x1df   : > { %4069 = vmatmul.mubr.msk.bf16.gmra.mrb[8].mxu0 %vm304_vm3, %v1219_v6  ;;  %3152 = vmatprep.mubr.bf16.mxu1 %v4760_v4  ;;  %v1848_v6 = vpop.permute.xlu0 %1847 }
 0x1e0   : > { %1337 = vmatprep.mubr.bf16.mxu0 %v4760_v4 }
 0x1e6   : > { %4159 = vmatmul.mubr.msk.bf16.gmra.mrb[12].mxu1 %vm304_vm3, %v5197_v29 }
 0x1e7   : > { %4070 = vmatmul.mubr.msk.bf16.gmra.mrb[12].mxu0 %vm304_vm3, %v5197_v29  ;;  %3162 = vmatprep.mubr.bf16.mxu1 %v4760_v4  ;;  %v223_v29 = vld [vmem:[%s5657_s2 + $0x40] sm:$0xff] }
 0x1e8   : > { %1347 = vmatprep.mubr.bf16.mxu0 %v4760_v4  ;;  %2083 = vperm.xlu1 %4741, %v223_v29  }
 0x1ee   : > { %4160 = vmatmul.mubr.msk.bf16.gmra.mrb[16].mxu1 %vm304_vm3, %v1223_v8 }
 0x1ef   : > { %4071 = vmatmul.mubr.msk.bf16.gmra.mrb[16].mxu0 %vm304_vm3, %v1223_v8  ;;  %3172 = vmatprep.mubr.bf16.mxu1 %v4760_v4  ;;  %v2186_v8 = vlaneseq }
 0x1f0   : > { %1357 = vmatprep.mubr.bf16.mxu0 %v4760_v4 }
 0x1f6   : > { %4161 = vmatmul.mubr.msk.bf16.gmra.mrb[20].mxu1 %vm304_vm3, %v5206_v31 }
 0x1f7   : > { %4072 = vmatmul.mubr.msk.bf16.gmra.mrb[20].mxu0 %vm304_vm3, %v5206_v31  ;;  %3182 = vmatprep.mubr.bf16.mxu1 %v4760_v4  ;;  %v225_v31 = vld [vmem:[%s5657_s2 + $0x50] sm:$0xff] }
 0x1f8   : > { %1367 = vmatprep.mubr.bf16.mxu0 %v4760_v4  ;;  %2093 = vperm.xlu1 %4741, %v225_v31  }
 0x1fe   : > { %4162 = vmatmul.mubr.msk.bf16.gmra.mrb[24].mxu1 %vm304_vm3, %v1227_v10 }
 0x1ff   : > { %4073 = vmatmul.mubr.msk.bf16.gmra.mrb[24].mxu0 %vm304_vm3, %v1227_v10  ;;  %3192 = vmatprep.mubr.bf16.mxu1 %v4760_v4 }
 0x200   : > { %1377 = vmatprep.mubr.bf16.mxu0 %v4760_v4 }
 0x206   : > { %4163 = vmatmul.mubr.msk.bf16.gmra.mrb[28].mxu1 %vm304_vm3, %v5209_v33 }
 0x207   : > { %4074 = vmatmul.mubr.msk.bf16.gmra.mrb[28].mxu0 %vm304_vm3, %v5209_v33  ;;  %3289 = vmatprep.mubr.bf16.mxu1 %v4760_v4  ;;  %v227_v33 = vld [vmem:[%s5657_s2 + $0x60] sm:$0xff] }
 0x208   : > { %1514 = vmatprep.mubr.bf16.mxu0 %v4760_v4  ;;  %2103 = vperm.xlu1 %4741, %v227_v33  }
 0x20c   : > { %2113 = vperm.xlu1 %4741, %v229_v35  }
 0x20e   : > { %4166 = vmatmul.mubr.msk.bf16.vlgmr.msra.gmra.mrb[0].mxu1 %vm304_vm3, %v1422_v49 }
 0x20f   : > { %4077 = vmatmul.mubr.msk.bf16.vlgmr.msra.gmra.mrb[0].mxu0 %vm304_vm3, %v1422_v49  ;;  %3299 = vmatprep.mubr.bf16.mxu1 %v4760_v4 }
 0x210   : > { %1524 = vmatprep.mubr.bf16.mxu0 %v4760_v4  ;;  %1690 = vmatpush1.bf16.msra.mxu0 %v1684_v62 }
 0x211   : > { %3425 = vmatpush1.bf16.msra.mxu1 %v3419_v63  ;;  %4096 = vmatprep.subr.msk.bf16.mxu0 %vm329_vm0, %v1863_v59 }
 0x212   : > { %4185 = vmatprep.subr.msk.bf16.mxu1 %vm329_vm0, %v3582_v13  ;;  %vm2228_vm0 = vcmask 130048  }
 0x216   : > { %4167 = vmatmul.mubr.msk.bf16.gmra.mrb[4].mxu1 %vm304_vm3, %v5264_v7 }
 0x217   : > { %4078 = vmatmul.mubr.msk.bf16.gmra.mrb[4].mxu0 %vm304_vm3, %v5264_v7  ;;  %3309 = vmatprep.mubr.bf16.mxu1 %v4760_v4  ;;  %v1850_v7 = vpop.permute.xlu1 %1849 }
 0x218   : > { %1534 = vmatprep.mubr.bf16.mxu0 %v4760_v4 }
 0x21b   : > { %v2049_v42 = vpop.permute.xlu1 %2048 }
 0x21e   : > { %4168 = vmatmul.mubr.msk.bf16.gmra.mrb[8].mxu1 %vm304_vm3, %v1426_v50 }
 0x21f   : > { %4079 = vmatmul.mubr.msk.bf16.gmra.mrb[8].mxu0 %vm304_vm3, %v1426_v50  ;;  %3319 = vmatprep.mubr.bf16.mxu1 %v4760_v4  ;;  %v2054_v21 = vpop.permute.xlu1 %2053 }
 0x220   : > { %1544 = vmatprep.mubr.bf16.mxu0 %v4760_v4 }
 0x226   : > { %4169 = vmatmul.mubr.msk.bf16.gmra.mrb[12].mxu1 %vm304_vm3, %v5267_v9 }
 0x227   : > { %4080 = vmatmul.mubr.msk.bf16.gmra.mrb[12].mxu0 %vm304_vm3, %v5267_v9  ;;  %3329 = vmatprep.mubr.bf16.mxu1 %v4760_v4  ;;  %v2187_v9 = vshrl.u32 %v2186_v8, 7 }
 0x228   : > { %1554 = vmatprep.mubr.bf16.mxu0 %v4760_v4 }
 0x229   : > { %v2192_v10 = vsub.s32 1, %v2187_v9 }
 0x22b   : > { %v5514_v48 = vrot.slane %v231_v12, %v2192_v10 }
 0x22e   : > { %4170 = vmatmul.mubr.msk.bf16.gmra.mrb[16].mxu1 %vm304_vm3, %v1430_v52 }
 0x22f   : > { %4081 = vmatmul.mubr.msk.bf16.gmra.mrb[16].mxu0 %vm304_vm3, %v1430_v52  ;;  %3339 = vmatprep.mubr.bf16.mxu1 %v4760_v4 }
 0x230   : > { %1564 = vmatprep.mubr.bf16.mxu0 %v4760_v4 }
 0x236   : > { %4171 = vmatmul.mubr.msk.bf16.gmra.mrb[20].mxu1 %vm304_vm3, %v5274_v11 }
 0x237   : > { %4082 = vmatmul.mubr.msk.bf16.gmra.mrb[20].mxu0 %vm304_vm3, %v5274_v11  ;;  %3349 = vmatprep.mubr.bf16.mxu1 %v4760_v4  ;;  %v2044_v11 = vpop.permute.xlu0 %2043 }
 0x238   : > { %1574 = vmatprep.mubr.bf16.mxu0 %v4760_v4 }
 0x23e   : > { %4172 = vmatmul.mubr.msk.bf16.gmra.mrb[24].mxu1 %vm304_vm3, %v1434_v54 }
 0x23f   : > { %4083 = vmatmul.mubr.msk.bf16.gmra.mrb[24].mxu0 %vm304_vm3, %v1434_v54  ;;  %3359 = vmatprep.mubr.bf16.mxu1 %v4760_v4 }
 0x240   : > { %1584 = vmatprep.mubr.bf16.mxu0 %v4760_v4 }
 0x246   : > { %4173 = vmatmul.mubr.msk.bf16.gmra.mrb[28].mxu1 %vm304_vm3, %v5277_v41 }
 0x247   : > { %4084 = vmatmul.mubr.msk.bf16.gmra.mrb[28].mxu0 %vm304_vm3, %v5277_v41  ;;  %3456 = vmatprep.mubr.bf16.mxu1 %v4760_v4  ;;  %v2188_v41 = vsub.s32 0, %v2187_v9 }
 0x248   : > { %1721 = vmatprep.mubr.bf16.mxu0 %v4760_v4 }
 0x24e   : > { %4176 = vmatmul.mubr.msk.bf16.vlgmr.msra.gmra.mrb[0].mxu1 %vm304_vm3, %v1629_v14 }
 0x24f   : > { %4087 = vmatmul.mubr.msk.bf16.vlgmr.msra.gmra.mrb[0].mxu0 %vm304_vm3, %v1629_v14  ;;  %3466 = vmatprep.mubr.bf16.mxu1 %v4760_v4 }
 0x250   : > { %1731 = vmatprep.mubr.bf16.mxu0 %v4760_v4  ;;  %1897 = vmatpush1.bf16.msra.mxu0 %v1891_v26 }
 0x251   : > { %3592 = vmatpush1.bf16.msra.mxu1 %v3586_v27 }
 0x256   : > { %4177 = vmatmul.mubr.msk.bf16.gmra.mrb[4].mxu1 %vm304_vm3, %v5320_v51 }
 0x257   : > { %4088 = vmatmul.mubr.msk.bf16.gmra.mrb[4].mxu0 %vm304_vm3, %v5320_v51  ;;  %3476 = vmatprep.mubr.bf16.mxu1 %v4760_v4  ;;  %v5516_v51 = vrot.slane %v231_v12, %v2188_v41 }
 0x258   : > { %1741 = vmatprep.mubr.bf16.mxu0 %v4760_v4 }
 0x25e   : > { %4178 = vmatmul.mubr.msk.bf16.gmra.mrb[8].mxu1 %vm304_vm3, %v1633_v15 }
 0x25f   : > { %4089 = vmatmul.mubr.msk.bf16.gmra.mrb[8].mxu0 %vm304_vm3, %v1633_v15  ;;  %3486 = vmatprep.mubr.bf16.mxu1 %v4760_v4 }
 0x260   : > { %1751 = vmatprep.mubr.bf16.mxu0 %v4760_v4 }
 0x266   : > { %4179 = vmatmul.mubr.msk.bf16.gmra.mrb[12].mxu1 %vm304_vm3, %v5323_v53 }
 0x267   : > { %4090 = vmatmul.mubr.msk.bf16.gmra.mrb[12].mxu0 %vm304_vm3, %v5323_v53  ;;  %3496 = vmatprep.mubr.bf16.mxu1 %v4760_v4 }
 0x268   : > { %1761 = vmatprep.mubr.bf16.mxu0 %v4760_v4 }
 0x26e   : > { %4180 = vmatmul.mubr.msk.bf16.gmra.mrb[16].mxu1 %vm304_vm3, %v5373_v16 }
 0x26f   : > { %4091 = vmatmul.mubr.msk.bf16.gmra.mrb[16].mxu0 %vm304_vm3, %v5373_v16  ;;  %3506 = vmatprep.mubr.bf16.mxu1 %v4760_v4  ;;  %v2059_v16 = vpop.permute.xlu0 %2058 }
 0x270   : > { %1771 = vmatprep.mubr.bf16.mxu0 %v4760_v4 }
 0x276   : > { %4181 = vmatmul.mubr.msk.bf16.gmra.mrb[20].mxu1 %vm304_vm3, %v5328_v55 }
 0x277   : > { %4092 = vmatmul.mubr.msk.bf16.gmra.mrb[20].mxu0 %vm304_vm3, %v5328_v55  ;;  %3516 = vmatprep.mubr.bf16.mxu1 %v4760_v4 }
 0x278   : > { %1781 = vmatprep.mubr.bf16.mxu0 %v4760_v4 }
 0x27e   : > { %4182 = vmatmul.mubr.msk.bf16.gmra.mrb[24].mxu1 %vm304_vm3, %v5376_v17 }
 0x27f   : > { %4093 = vmatmul.mubr.msk.bf16.gmra.mrb[24].mxu0 %vm304_vm3, %v5376_v17  ;;  %3526 = vmatprep.mubr.bf16.mxu1 %v4760_v4 }
 0x280   : > { %1791 = vmatprep.mubr.bf16.mxu0 %v4760_v4 }
 0x286   : > { %4183 = vmatmul.mubr.msk.bf16.gmra.mrb[28].mxu1 %vm304_vm3, %v5331_v57 }
 0x287   : > { %4094 = vmatmul.mubr.msk.bf16.gmra.mrb[28].mxu0 %vm304_vm3, %v5331_v57  ;;  %3623 = vmatprep.mubr.bf16.mxu1 %v4760_v4 }
 0x288   : > { %1928 = vmatprep.mubr.bf16.mxu0 %v4760_v4 }
 0x28e   : > { %4186 = vmatmul.mubr.msk.bf16.vlgmr.msra.gmra.mrb[0].mxu1 %vm304_vm3, %v1836_v36 }
 0x28f   : > { %4097 = vmatmul.mubr.msk.bf16.vlgmr.msra.gmra.mrb[0].mxu0 %vm304_vm3, %v1836_v36  ;;  %3633 = vmatprep.mubr.bf16.mxu1 %v4760_v4 }
 0x290   : > { %1938 = vmatprep.mubr.bf16.mxu0 %v4760_v4 }
 0x296   : > { %4187 = vmatmul.mubr.msk.bf16.gmra.mrb[4].mxu1 %vm304_vm3, %v1838_v37 }
 0x297   : > { %4098 = vmatmul.mubr.msk.bf16.gmra.mrb[4].mxu0 %vm304_vm3, %v1838_v37  ;;  %3643 = vmatprep.mubr.bf16.mxu1 %v4760_v4 }
 0x298   : > { %1948 = vmatprep.mubr.bf16.mxu0 %v4760_v4 }
 0x29e   : > { %4188 = vmatmul.mubr.msk.bf16.gmra.mrb[8].mxu1 %vm304_vm3, %v1840_v38 }
 0x29f   : > { %4099 = vmatmul.mubr.msk.bf16.gmra.mrb[8].mxu0 %vm304_vm3, %v1840_v38  ;;  %3653 = vmatprep.mubr.bf16.mxu1 %v4760_v4 }
 0x2a0   : > { %1958 = vmatprep.mubr.bf16.mxu0 %v4760_v4 }
 0x2a6   : > { %4189 = vmatmul.mubr.msk.bf16.gmra.mrb[12].mxu1 %vm304_vm3, %v1842_v39 }
 0x2a7   : > { %4100 = vmatmul.mubr.msk.bf16.gmra.mrb[12].mxu0 %vm304_vm3, %v1842_v39  ;;  %3663 = vmatprep.mubr.bf16.mxu1 %v4760_v4 }
 0x2a8   : > { %1968 = vmatprep.mubr.bf16.mxu0 %v4760_v4 }
 0x2ae   : > { %4190 = vmatmul.mubr.msk.bf16.gmra.mrb[16].mxu1 %vm304_vm3, %v1844_v40 }
 0x2af   : > { %4101 = vmatmul.mubr.msk.bf16.gmra.mrb[16].mxu0 %vm304_vm3, %v1844_v40  ;;  %3673 = vmatprep.mubr.bf16.mxu1 %v4760_v4 }
 0x2b0   : > { %1978 = vmatprep.mubr.bf16.mxu0 %v4760_v4 }
 0x2b6   : > { %4191 = vmatmul.mubr.msk.bf16.gmra.mrb[20].mxu1 %vm304_vm3, %v1846_v5 }
 0x2b7   : > { %4102 = vmatmul.mubr.msk.bf16.gmra.mrb[20].mxu0 %vm304_vm3, %v1846_v5  ;;  %3683 = vmatprep.mubr.bf16.mxu1 %v4760_v4 }
 0x2b8   : > { %1988 = vmatprep.mubr.bf16.mxu0 %v4760_v4 }
 0x2be   : > { %4192 = vmatmul.mubr.msk.bf16.gmra.mrb[24].mxu1 %vm304_vm3, %v1848_v6 }
 0x2bf   : > { %4103 = vmatmul.mubr.msk.bf16.gmra.mrb[24].mxu0 %vm304_vm3, %v1848_v6  ;;  %3693 = vmatprep.mubr.bf16.mxu1 %v4760_v4 }
 0x2c0   : > { %1998 = vmatprep.mubr.bf16.mxu0 %v4760_v4 }
 0x2c6   : > { %4193 = vmatmul.mubr.msk.bf16.gmra.mrb[28].mxu1 %vm304_vm3, %v1850_v7 }
 0x2c7   : > { %4104 = vmatmul.mubr.msk.bf16.gmra.mrb[28].mxu0 %vm304_vm3, %v1850_v7 }
 0x361   : > { %v3625_v43 = vpop.f32.mrb[0].mxu1 }
 0x362   : > { %v1930_v44 = vpop.f32.mrb[0].mxu0  ;;  %v3736_v45 = vadd.f32 %v3625_v43, %v2044_v11  ;;  %v3627_v46 = vpop.f32.mrb[1].mxu1 }
 0x363   : > { %v2121_v4 = vadd.f32 %v2044_v11, %v1930_v44  ;;  %v1932_v47 = vpop.f32.mrb[1].mxu0  ;;  %v3737_v49 = vadd.f32 %v3627_v46, %v2044_v11  ;;  %v3629_v50 = vpop.f32.mrb[2].mxu1 }
 0x364   : > { %v3768_v52 = vmax.f32 %v3736_v45, 0.0  ;;  %v2122_v53 = vadd.f32 %v2044_v11, %v1932_v47  ;;  %v1934_v54 = vpop.f32.mrb[2].mxu0  ;;  %v3738_v55 = vadd.f32 %v3629_v50, %v2049_v42  ;;  %v3631_v56 = vpop.f32.mrb[3].mxu1 }
 0x365   : > { %v2153_v57 = vmax.f32 %v2121_v4, 0.0  ;;  %v3769_v58 = vmax.f32 %v3737_v49, 0.0  ;;  %v2123_v59 = vadd.f32 %v2049_v42, %v1934_v54  ;;  %v1936_v60 = vpop.f32.mrb[3].mxu0  ;;  %v3739_v61 = vadd.f32 %v3631_v56, %v2049_v42  ;;  %v2069_v46 = vpop.permute.xlu0 %2068 }
 0x366   : > { %v2154_v62 = vmax.f32 %v2122_v53, 0.0  ;;  %v3770_v63 = vmax.f32 %v3738_v55, 0.0  ;;  %v2124_v13 = vadd.f32 %v2049_v42, %v1936_v60  ;;  %v3800_v18 = vmul.f32 %v3768_v52, %v5516_v51  ;;  %v2064_v52 = vpop.permute.xlu1 %2063 }
 0x367   : > { %v3801_v14 = vmul.f32 %v3769_v58, %v5514_v48  ;;  %v3771_v15 = vmax.f32 %v3739_v61, 0.0  ;;  %v2196_v17 = vmul.f32 %v5516_v51, %v2153_v57  ;;  %v2155_v22 = vmax.f32 %v2123_v59, 0.0 }
 0x368   : > { %v2197_v19 = vmul.f32 %v5514_v48, %v2154_v62  ;;  %v2156_v20 = vmax.f32 %v2124_v13, 0.0  ;;  %v3802_v23 = vmul.f32 %v3770_v63, %v5516_v51 }
 0x369   : > { %v3803_v24 = vmul.f32 %v3771_v15, %v5514_v48  ;;  %v3635_v25 = vpop.f32.mrb[4].mxu1  ;;  %v3832_v26 = vsel %vm2228_vm0, %v3801_v14, 0.0  ;;  %v2198_v10 = vmul.f32 %v5516_v51, %v2155_v22 }
 0x36a   : > { %v2199_v27 = vmul.f32 %v5514_v48, %v2156_v20  ;;  %v1940_v28 = vpop.f32.mrb[4].mxu0  ;;  %v3740_v1 = vadd.f32 %v3635_v25, %v2054_v21  ;;  %v3637_v3 = vpop.f32.mrb[5].mxu1  ;;  %v2229_v2 = vsel %vm2228_vm0, %v2197_v19, 0.0  ;;  %v3833_v0 = vadd.f32 %v3832_v26, %v3800_v18 }
 0x36b   : > { %v2125_v29 = vadd.f32 %v2054_v21, %v1940_v28  ;;  %v1942_v30 = vpop.f32.mrb[5].mxu0  ;;  %v3741_v31 = vadd.f32 %v3637_v3, %v2054_v21  ;;  %v3639_v32 = vpop.f32.mrb[6].mxu1  ;;  %v2230_v33 = vadd.f32 %v2229_v2, %v2196_v17  ;;  %v3836_v34 = vsel %vm2228_vm0, %v3803_v24, 0.0 }
 0x36c   : > { %v3772_v35 = vmax.f32 %v3740_v1, 0.0  ;;  %v2126_v36 = vadd.f32 %v2054_v21, %v1942_v30  ;;  %v1944_v37 = vpop.f32.mrb[6].mxu0  ;;  %v3742_v38 = vadd.f32 %v3639_v32, %v2059_v16  ;;  %v3641_v39 = vpop.f32.mrb[7].mxu1  ;;  %3834 = vadd.xlane.f32.xlu0 %v3833_v0  ;;  %v3837_v40 = vadd.f32 %v3836_v34, %v3802_v23 }
 0x36d   : > { %v2157_v5 = vmax.f32 %v2125_v29, 0.0  ;;  %v3773_v6 = vmax.f32 %v3741_v31, 0.0  ;;  %v2127_v7 = vadd.f32 %v2059_v16, %v1944_v37  ;;  %v1946_v8 = vpop.f32.mrb[7].mxu0  ;;  %v3743_v9 = vadd.f32 %v3641_v39, %v2059_v16  ;;  %2231 = vadd.xlane.f32.xlu1 %v2230_v33  ;;  %v2079_v34 = vpop.permute.xlu0 %2078 }
 0x36e   : > { %v2158_v11 = vmax.f32 %v2126_v36, 0.0  ;;  %v3774_v12 = vmax.f32 %v3742_v38, 0.0  ;;  %v2128_v41 = vadd.f32 %v2059_v16, %v1946_v8  ;;  %v3804_v42 = vmul.f32 %v3772_v35, %v5516_v51  ;;  %v2074_v39 = vpop.permute.xlu1 %2073 }
 0x36f   : > { %v3805_v43 = vmul.f32 %v3773_v6, %v5514_v48  ;;  %v2159_v44 = vmax.f32 %v2127_v7, 0.0  ;;  %v3775_v45 = vmax.f32 %v3743_v9, 0.0  ;;  %v2200_v4 = vmul.f32 %v5516_v51, %v2157_v5 }
 0x370   : > { %v2201_v47 = vmul.f32 %v5514_v48, %v2158_v11  ;;  %v2160_v49 = vmax.f32 %v2128_v41, 0.0  ;;  %v2233_v50 = vsel %vm2228_vm0, %v2199_v27, 0.0  ;;  %v3806_v53 = vmul.f32 %v3774_v12, %v5516_v51 }
 0x371   : > { %v3807_v54 = vmul.f32 %v3775_v45, %v5514_v48  ;;  %3838 = vadd.xlane.f32.xlu1 %v3837_v40  ;;  %v2234_v55 = vadd.f32 %v2233_v50, %v2198_v10  ;;  %v3645_v56 = vpop.f32.mrb[8].mxu1  ;;  %v3840_v57 = vsel %vm2228_vm0, %v3805_v43, 0.0  ;;  %v2202_v13 = vmul.f32 %v5516_v51, %v2159_v44 }
 0x372   : > { %v2203_v58 = vmul.f32 %v5514_v48, %v2160_v49  ;;  %v1950_v59 = vpop.f32.mrb[8].mxu0  ;;  %v3744_v60 = vadd.f32 %v3645_v56, %v2064_v52  ;;  %v3647_v61 = vpop.f32.mrb[9].mxu1  ;;  %v2237_v62 = vsel %vm2228_vm0, %v2201_v47, 0.0  ;;  %v3841_v63 = vadd.f32 %v3840_v57, %v3804_v42 }
 0x373   : > { %2235 = vadd.xlane.f32.xlu0 %v2234_v55  ;;  %v2129_v14 = vadd.f32 %v2064_v52, %v1950_v59  ;;  %v1952_v15 = vpop.f32.mrb[9].mxu0  ;;  %v3745_v16 = vadd.f32 %v3647_v61, %v2064_v52  ;;  %v3649_v17 = vpop.f32.mrb[10].mxu1  ;;  %v2238_v18 = vadd.f32 %v2237_v62, %v2200_v4  ;;  %v3844_v29 = vsel %vm2228_vm0, %v3807_v54, 0.0 }
 0x374   : > { %v3776_v19 = vmax.f32 %v3744_v60, 0.0  ;;  %v2130_v20 = vadd.f32 %v2064_v52, %v1952_v15  ;;  %v1954_v21 = vpop.f32.mrb[10].mxu0  ;;  %v3746_v22 = vadd.f32 %v3649_v17, %v2069_v46  ;;  %v3651_v23 = vpop.f32.mrb[11].mxu1  ;;  %v2241_v24 = vsel %vm2228_vm0, %v2203_v58, 0.0 }
 0x375   : > { %v2161_v25 = vmax.f32 %v2129_v14, 0.0  ;;  %v3777_v26 = vmax.f32 %v3745_v16, 0.0  ;;  %v2131_v27 = vadd.f32 %v2069_v46, %v1954_v21  ;;  %v1956_v28 = vpop.f32.mrb[11].mxu0  ;;  %v3747_v1 = vadd.f32 %v3651_v23, %v2069_v46  ;;  %v2084_v23 = vpop.permute.xlu1 %2083 }
 0x376   : > { %v2162_v3 = vmax.f32 %v2130_v20, 0.0  ;;  %v3778_v2 = vmax.f32 %v3746_v22, 0.0  ;;  %v2132_v0 = vadd.f32 %v2069_v46, %v1956_v28  ;;  %v3808_v30 = vmul.f32 %v3776_v19, %v5516_v51 }
 0x377   : > { %v3809_v31 = vmul.f32 %v3777_v26, %v5514_v48  ;;  %v2163_v32 = vmax.f32 %v2131_v27, 0.0  ;;  %v3779_v33 = vmax.f32 %v3747_v1, 0.0  ;;  %2239 = vadd.xlane.f32.xlu0 %v2238_v18  ;;  %v2204_v35 = vmul.f32 %v5516_v51, %v2161_v25  ;;  %v2089_v18 = vpop.permute.xlu0 %2088 }
 0x378   : > { %v2205_v36 = vmul.f32 %v5514_v48, %v2162_v3  ;;  %v2164_v37 = vmax.f32 %v2132_v0, 0.0  ;;  %v2242_v38 = vadd.f32 %v2241_v24, %v2202_v13  ;;  %v3810_v40 = vmul.f32 %v3778_v2, %v5516_v51 }
 0x379   : > { %v3811_v5 = vmul.f32 %v3779_v33, %v5514_v48  ;;  %v3655_v6 = vpop.f32.mrb[12].mxu1  ;;  %v3845_v7 = vadd.f32 %v3844_v29, %v3806_v53  ;;  %v3848_v8 = vsel %vm2228_vm0, %v3809_v31, 0.0  ;;  %v2206_v43 = vmul.f32 %v5516_v51, %v2163_v32 }
 0x37a   : > { %v2207_v9 = vmul.f32 %v5514_v48, %v2164_v37  ;;  %2243 = vadd.xlane.f32.xlu1 %v2242_v38  ;;  %v1960_v10 = vpop.f32.mrb[12].mxu0  ;;  %v3748_v11 = vadd.f32 %v3655_v6, %v2074_v39  ;;  %v3657_v12 = vpop.f32.mrb[13].mxu1  ;;  %v2245_v41 = vsel %vm2228_vm0, %v2205_v36, 0.0  ;;  %v3849_v42 = vadd.f32 %v3848_v8, %v3808_v30 }
 0x37b   : > { %3842 = vadd.xlane.f32.xlu0 %v3841_v63  ;;  %v2133_v44 = vadd.f32 %v2074_v39, %v1960_v10  ;;  %v1962_v45 = vpop.f32.mrb[13].mxu0  ;;  %v3749_v46 = vadd.f32 %v3657_v12, %v2074_v39  ;;  %v3659_v4 = vpop.f32.mrb[14].mxu1  ;;  %v2246_v47 = vadd.f32 %v2245_v41, %v2204_v35  ;;  %v3852_v13 = vsel %vm2228_vm0, %v3811_v5, 0.0 }
 0x37c   : > { %v3780_v49 = vmax.f32 %v3748_v11, 0.0  ;;  %v2134_v50 = vadd.f32 %v2074_v39, %v1962_v45  ;;  %v1964_v52 = vpop.f32.mrb[14].mxu0  ;;  %v3750_v53 = vadd.f32 %v3659_v4, %v2079_v34  ;;  %v3661_v54 = vpop.f32.mrb[15].mxu1  ;;  %v2249_v55 = vsel %vm2228_vm0, %v2207_v9, 0.0 }
 0x37d   : > { %v2165_v56 = vmax.f32 %v2133_v44, 0.0  ;;  %v3781_v57 = vmax.f32 %v3749_v46, 0.0  ;;  %v2135_v58 = vadd.f32 %v2079_v34, %v1964_v52  ;;  %v1966_v59 = vpop.f32.mrb[15].mxu0  ;;  %v3751_v60 = vadd.f32 %v3661_v54, %v2079_v34  ;;  %v2094_v54 = vpop.permute.xlu1 %2093 }
 0x37e   : > { %v2166_v61 = vmax.f32 %v2134_v50, 0.0  ;;  %3846 = vadd.xlane.f32.xlu1 %v3845_v7  ;;  %v3782_v62 = vmax.f32 %v3750_v53, 0.0  ;;  %v2136_v63 = vadd.f32 %v2079_v34, %v1966_v59  ;;  %v3812_v14 = vmul.f32 %v3780_v49, %v5516_v51 }
 0x37f   : > { %v3813_v15 = vmul.f32 %v3781_v57, %v5514_v48  ;;  %v2167_v16 = vmax.f32 %v2135_v58, 0.0  ;;  %v3783_v17 = vmax.f32 %v3751_v60, 0.0  ;;  %2247 = vadd.xlane.f32.xlu0 %v2246_v47  ;;  %v2208_v19 = vmul.f32 %v5516_v51, %v2165_v56  ;;  %v2099_v47 = vpop.permute.xlu0 %2098 }
 0x380   : > { %v2209_v20 = vmul.f32 %v5514_v48, %v2166_v61  ;;  %v2168_v21 = vmax.f32 %v2136_v63, 0.0  ;;  %v2250_v22 = vadd.f32 %v2249_v55, %v2206_v43  ;;  %v3814_v24 = vmul.f32 %v3782_v62, %v5516_v51 }
 0x381   : > { %v3815_v25 = vmul.f32 %v3783_v17, %v5514_v48  ;;  %v3665_v26 = vpop.f32.mrb[16].mxu1  ;;  %v3853_v27 = vadd.f32 %v3852_v13, %v3810_v40  ;;  %v3856_v28 = vsel %vm2228_vm0, %v3813_v15, 0.0  ;;  %v2210_v31 = vmul.f32 %v5516_v51, %v2167_v16 }
 0x382   : > { %v2211_v1 = vmul.f32 %v5514_v48, %v2168_v21  ;;  %2251 = vadd.xlane.f32.xlu1 %v2250_v22  ;;  %v1970_v3 = vpop.f32.mrb[16].mxu0  ;;  %v3752_v2 = vadd.f32 %v3665_v26, %v2084_v23  ;;  %v3667_v0 = vpop.f32.mrb[17].mxu1  ;;  %v2253_v29 = vsel %vm2228_vm0, %v2209_v20, 0.0  ;;  %v3857_v30 = vadd.f32 %v3856_v28, %v3812_v14 }
 0x383   : > { %3850 = vadd.xlane.f32.xlu0 %v3849_v42  ;;  %v2137_v32 = vadd.f32 %v2084_v23, %v1970_v3  ;;  %v1972_v33 = vpop.f32.mrb[17].mxu0  ;;  %v3753_v34 = vadd.f32 %v3667_v0, %v2084_v23  ;;  %v3669_v35 = vpop.f32.mrb[18].mxu1  ;;  %v2254_v36 = vadd.f32 %v2253_v29, %v2208_v19  ;;  %v3860_v43 = vsel %vm2228_vm0, %v3815_v25, 0.0 }
 0x384   : > { %v3784_v37 = vmax.f32 %v3752_v2, 0.0  ;;  %v2138_v38 = vadd.f32 %v2084_v23, %v1972_v33  ;;  %v1974_v39 = vpop.f32.mrb[18].mxu0  ;;  %v3754_v40 = vadd.f32 %v3669_v35, %v2089_v18  ;;  %v3671_v5 = vpop.f32.mrb[19].mxu1  ;;  %v2257_v6 = vsel %vm2228_vm0, %v2211_v1, 0.0 }
 0x385   : > { %v2169_v7 = vmax.f32 %v2137_v32, 0.0  ;;  %v3785_v8 = vmax.f32 %v3753_v34, 0.0  ;;  %v2139_v9 = vadd.f32 %v2089_v18, %v1974_v39  ;;  %v1976_v10 = vpop.f32.mrb[19].mxu0  ;;  %v3755_v11 = vadd.f32 %v3671_v5, %v2089_v18  ;;  %v2104_v5 = vpop.permute.xlu1 %2103 }
 0x386   : > { %v2170_v12 = vmax.f32 %v2138_v38, 0.0  ;;  %3854 = vadd.xlane.f32.xlu1 %v3853_v27  ;;  %v3786_v41 = vmax.f32 %v3754_v40, 0.0  ;;  %v2140_v42 = vadd.f32 %v2089_v18, %v1976_v10  ;;  %v3816_v44 = vmul.f32 %v3784_v37, %v5516_v51 }
 0x387   : > { %v3817_v45 = vmul.f32 %v3785_v8, %v5514_v48  ;;  %v2171_v46 = vmax.f32 %v2139_v9, 0.0  ;;  %v3787_v4 = vmax.f32 %v3755_v11, 0.0  ;;  %2255 = vadd.xlane.f32.xlu0 %v2254_v36  ;;  %v2212_v49 = vmul.f32 %v5516_v51, %v2169_v7  ;;  %v2109_v36 = vpop.permute.xlu0 %2108 }
 0x388   : > { %v2213_v50 = vmul.f32 %v5514_v48, %v2170_v12  ;;  %v2172_v52 = vmax.f32 %v2140_v42, 0.0  ;;  %v2258_v53 = vadd.f32 %v2257_v6, %v2210_v31  ;;  %v3818_v55 = vmul.f32 %v3786_v41, %v5516_v51 }
 0x389   : > { %v3819_v56 = vmul.f32 %v3787_v4, %v5514_v48  ;;  %v3675_v57 = vpop.f32.mrb[20].mxu1  ;;  %v3861_v58 = vadd.f32 %v3860_v43, %v3814_v24  ;;  %v3864_v59 = vsel %vm2228_vm0, %v3817_v45, 0.0  ;;  %v2214_v15 = vmul.f32 %v5516_v51, %v2171_v46 }
 0x38a   : > { %v2215_v60 = vmul.f32 %v5514_v48, %v2172_v52  ;;  %2259 = vadd.xlane.f32.xlu1 %v2258_v53  ;;  %v1980_v61 = vpop.f32.mrb[20].mxu0  ;;  %v3756_v62 = vadd.f32 %v3675_v57, %v2094_v54  ;;  %v3677_v63 = vpop.f32.mrb[21].mxu1  ;;  %v2261_v13 = vsel %vm2228_vm0, %v2213_v50, 0.0  ;;  %v3865_v14 = vadd.f32 %v3864_v59, %v3816_v44 }
 0x38b   : > { %3858 = vadd.xlane.f32.xlu0 %v3857_v30  ;;  %v2141_v16 = vadd.f32 %v2094_v54, %v1980_v61  ;;  %v1982_v17 = vpop.f32.mrb[21].mxu0  ;;  %v3757_v18 = vadd.f32 %v3677_v63, %v2094_v54  ;;  %v3679_v19 = vpop.f32.mrb[22].mxu1  ;;  %v2262_v20 = vadd.f32 %v2261_v13, %v2212_v49  ;;  %v3868_v31 = vsel %vm2228_vm0, %v3819_v56, 0.0 }
 0x38c   : > { %v3788_v21 = vmax.f32 %v3756_v62, 0.0  ;;  %v2142_v22 = vadd.f32 %v2094_v54, %v1982_v17  ;;  %v1984_v23 = vpop.f32.mrb[22].mxu0  ;;  %v3758_v24 = vadd.f32 %v3679_v19, %v2099_v47  ;;  %v3681_v25 = vpop.f32.mrb[23].mxu1  ;;  %v2265_v26 = vsel %vm2228_vm0, %v2215_v60, 0.0 }
 0x38d   : > { %v2173_v27 = vmax.f32 %v2141_v16, 0.0  ;;  %v3789_v28 = vmax.f32 %v3757_v18, 0.0  ;;  %v2143_v1 = vadd.f32 %v2099_v47, %v1984_v23  ;;  %v1986_v3 = vpop.f32.mrb[23].mxu0  ;;  %v3759_v2 = vadd.f32 %v3681_v25, %v2099_v47  ;;  %v2114_v25 = vpop.permute.xlu1 %2113 }
 0x38e   : > { %v2174_v0 = vmax.f32 %v2142_v22, 0.0  ;;  %3862 = vadd.xlane.f32.xlu1 %v3861_v58  ;;  %v3790_v29 = vmax.f32 %v3758_v24, 0.0  ;;  %v2144_v30 = vadd.f32 %v2099_v47, %v1986_v3  ;;  %v3820_v32 = vmul.f32 %v3788_v21, %v5516_v51 }
 0x38f   : > { %v3821_v33 = vmul.f32 %v3789_v28, %v5514_v48  ;;  %v2175_v34 = vmax.f32 %v2143_v1, 0.0  ;;  %v3791_v35 = vmax.f32 %v3759_v2, 0.0  ;;  %2263 = vadd.xlane.f32.xlu0 %v2262_v20  ;;  %v2216_v37 = vmul.f32 %v5516_v51, %v2173_v27  ;;  %v2119_v20 = vpop.permute.xlu0 %2118 }
 0x390   : > { %v2217_v38 = vmul.f32 %v5514_v48, %v2174_v0  ;;  %v2176_v39 = vmax.f32 %v2144_v30, 0.0  ;;  %v2266_v40 = vadd.f32 %v2265_v26, %v2214_v15  ;;  %v3822_v6 = vmul.f32 %v3790_v29, %v5516_v51 }
 0x391   : > { %v3823_v7 = vmul.f32 %v3791_v35, %v5514_v48  ;;  %v3685_v8 = vpop.f32.mrb[24].mxu1  ;;  %v3869_v9 = vadd.f32 %v3868_v31, %v3818_v55  ;;  %v3872_v10 = vsel %vm2228_vm0, %v3821_v33, 0.0  ;;  %v2218_v45 = vmul.f32 %v5516_v51, %v2175_v34 }
 0x392   : > { %v2219_v11 = vmul.f32 %v5514_v48, %v2176_v39  ;;  %2267 = vadd.xlane.f32.xlu1 %v2266_v40  ;;  %v1990_v12 = vpop.f32.mrb[24].mxu0  ;;  %v3760_v41 = vadd.f32 %v3685_v8, %v2104_v5  ;;  %v3687_v42 = vpop.f32.mrb[25].mxu1  ;;  %v2269_v43 = vsel %vm2228_vm0, %v2217_v38, 0.0  ;;  %v3873_v44 = vadd.f32 %v3872_v10, %v3820_v32 }
 0x393   : > { %3866 = vadd.xlane.f32.xlu0 %v3865_v14  ;;  %v2145_v46 = vadd.f32 %v2104_v5, %v1990_v12  ;;  %v1992_v4 = vpop.f32.mrb[25].mxu0  ;;  %v3761_v47 = vadd.f32 %v3687_v42, %v2104_v5  ;;  %v3689_v49 = vpop.f32.mrb[26].mxu1  ;;  %v2270_v50 = vadd.f32 %v2269_v43, %v2216_v37  ;;  %v3876_v15 = vsel %vm2228_vm0, %v3823_v7, 0.0 }
 0x394   : > { %v3792_v52 = vmax.f32 %v3760_v41, 0.0  ;;  %v2146_v53 = vadd.f32 %v2104_v5, %v1992_v4  ;;  %v1994_v54 = vpop.f32.mrb[26].mxu0  ;;  %v3762_v55 = vadd.f32 %v3689_v49, %v2109_v36  ;;  %v3691_v56 = vpop.f32.mrb[27].mxu1  ;;  %v2273_v57 = vsel %vm2228_vm0, %v2219_v11, 0.0 }
 0x395   : > { %v2177_v58 = vmax.f32 %v2145_v46, 0.0  ;;  %v3793_v59 = vmax.f32 %v3761_v47, 0.0  ;;  %v2147_v60 = vadd.f32 %v2109_v36, %v1994_v54  ;;  %v1996_v61 = vpop.f32.mrb[27].mxu0  ;;  %v3763_v62 = vadd.f32 %v3691_v56, %v2109_v36 }
 0x396   : > { %v3824_v63 = vmul.f32 %v3792_v52, %v5516_v51  ;;  %v2178_v13 = vmax.f32 %v2146_v53, 0.0  ;;  %3870 = vadd.xlane.f32.xlu1 %v3869_v9  ;;  %v2148_v14 = vadd.f32 %v2109_v36, %v1996_v61  ;;  %v3794_v18 = vmax.f32 %v3762_v55, 0.0 }
 0x397   : > { %v3825_v16 = vmul.f32 %v3793_v59, %v5514_v48  ;;  %v2179_v17 = vmax.f32 %v2147_v60, 0.0  ;;  %v3795_v19 = vmax.f32 %v3763_v62, 0.0  ;;  %2271 = vadd.xlane.f32.xlu0 %v2270_v50  ;;  %v2220_v21 = vmul.f32 %v5516_v51, %v2177_v58 }
 0x398   : > { %v2221_v22 = vmul.f32 %v5514_v48, %v2178_v13  ;;  %v2180_v23 = vmax.f32 %v2148_v14, 0.0  ;;  %v2274_v24 = vadd.f32 %v2273_v57, %v2218_v45  ;;  %v3877_v1 = vadd.f32 %v3876_v15, %v3822_v6 }
 0x399   : > { %v2222_v26 = vmul.f32 %v5516_v51, %v2179_v17  ;;  %v3827_v27 = vmul.f32 %v3795_v19, %v5514_v48  ;;  %v3695_v28 = vpop.f32.mrb[28].mxu1  ;;  %v3880_v3 = vsel %vm2228_vm0, %v3825_v16, 0.0  ;;  %v3826_v46 = vmul.f32 %v3794_v18, %v5516_v51 }
 0x39a   : > { %v2223_v2 = vmul.f32 %v5514_v48, %v2180_v23  ;;  %2275 = vadd.xlane.f32.xlu1 %v2274_v24  ;;  %v2000_v0 = vpop.f32.mrb[28].mxu0  ;;  %v3764_v29 = vadd.f32 %v3695_v28, %v2114_v25  ;;  %v3697_v30 = vpop.f32.mrb[29].mxu1  ;;  %v2277_v31 = vsel %vm2228_vm0, %v2221_v22, 0.0  ;;  %v3881_v32 = vadd.f32 %v3880_v3, %v3824_v63 }
 0x39b   : > { %3874 = vadd.xlane.f32.xlu0 %v3873_v44  ;;  %v2149_v33 = vadd.f32 %v2114_v25, %v2000_v0  ;;  %v2002_v34 = vpop.f32.mrb[29].mxu0  ;;  %v3765_v35 = vadd.f32 %v3697_v30, %v2114_v25  ;;  %v3699_v36 = vpop.f32.mrb[30].mxu1  ;;  %v2278_v37 = vadd.f32 %v2277_v31, %v2220_v21  ;;  %v3884_v38 = vsel %vm2228_vm0, %v3827_v27, 0.0 }
 0x39c   : > { %v3796_v39 = vmax.f32 %v3764_v29, 0.0  ;;  %v2150_v40 = vadd.f32 %v2114_v25, %v2002_v34  ;;  %v2004_v5 = vpop.f32.mrb[30].mxu0  ;;  %v3766_v6 = vadd.f32 %v3699_v36, %v2119_v20  ;;  %v3701_v7 = vpop.f32.mrb[31].mxu1  ;;  %v2281_v8 = vsel %vm2228_vm0, %v2223_v2, 0.0 }
 0x39d   : > { %v2181_v9 = vmax.f32 %v2149_v33, 0.0  ;;  %v3797_v10 = vmax.f32 %v3765_v35, 0.0  ;;  %v2151_v11 = vadd.f32 %v2119_v20, %v2004_v5  ;;  %v2006_v12 = vpop.f32.mrb[31].mxu0  ;;  %v3767_v41 = vadd.f32 %v3701_v7, %v2119_v20 }
 0x39e   : > { %v3828_v42 = vmul.f32 %v3796_v39, %v5516_v51  ;;  %v2182_v43 = vmax.f32 %v2150_v40, 0.0  ;;  %3878 = vadd.xlane.f32.xlu1 %v3877_v1  ;;  %v3798_v44 = vmax.f32 %v3766_v6, 0.0  ;;  %v2152_v45 = vadd.f32 %v2119_v20, %v2006_v12 }
 0x39f   : > { %v3829_v4 = vmul.f32 %v3797_v10, %v5514_v48  ;;  %v2183_v47 = vmax.f32 %v2151_v11, 0.0  ;;  %v3799_v49 = vmax.f32 %v3767_v41, 0.0  ;;  %2279 = vadd.xlane.f32.xlu0 %v2278_v37  ;;  %v2282_v54 = vadd.f32 %v2281_v8, %v2222_v26 }
 0x3a0   : > { %v2225_v50 = vmul.f32 %v5514_v48, %v2182_v43  ;;  %v3830_v52 = vmul.f32 %v3798_v44, %v5516_v51  ;;  %v2184_v53 = vmax.f32 %v2152_v45, 0.0  ;;  %v2224_v55 = vmul.f32 %v5516_v51, %v2181_v9 }
 0x3a1   : > { %v3831_v56 = vmul.f32 %v3799_v49, %v5514_v48  ;;  %v3885_v57 = vadd.f32 %v3884_v38, %v3826_v46  ;;  %v3888_v58 = vsel %vm2228_vm0, %v3829_v4, 0.0  ;;  %v2226_v62 = vmul.f32 %v5516_v51, %v2183_v47 }
 0x3a2   : > { %v2227_v59 = vmul.f32 %v5514_v48, %v2184_v53  ;;  %2283 = vadd.xlane.f32.xlu1 %v2282_v54  ;;  %v2285_v60 = vsel %vm2228_vm0, %v2225_v50, 0.0  ;;  %v3889_v61 = vadd.f32 %v3888_v58, %v3828_v42 }
 0x3a3   : > { %3882 = vadd.xlane.f32.xlu0 %v3881_v32  ;;  %v2286_v63 = vadd.f32 %v2285_v60, %v2224_v55  ;;  %v3892_v13 = vsel %vm2228_vm0, %v3831_v56, 0.0 }
 0x3a4   : > { %v2289_v14 = vsel %vm2228_vm0, %v2227_v59, 0.0  ;;  %v3893_v15 = vadd.f32 %v3892_v13, %v3830_v52 }
 0x3a5   : > { %v2290_v16 = vadd.f32 %v2289_v14, %v2226_v62 }
 0x3a6   : > { %3886 = vadd.xlane.f32.xlu1 %v3885_v57 }
 0x3a7   : > { %2287 = vadd.xlane.f32.xlu0 %v2286_v63 }
 0x3aa   : > { %2291 = vadd.xlane.f32.xlu1 %v2290_v16 }
 0x3ab   : > { %3890 = vadd.xlane.f32.xlu0 %v3889_v61 }
 0x3ae   : > { %3894 = vadd.xlane.f32.xlu1 %v3893_v15 }
 0x3f9   : > { %v3835_v48 = vpop.xlane.xlu0 %3834 }
 0x3fa   : > { %v2232_v17 = vpop.xlane.xlu1 %2231 }
 0x3fb   : > { %v3896_v18 = vadd.f32 %v3835_v48, %v2232_v17 }
 0x3fd   : > { %v3912_v51 = vmul.f32 0.00390625, %v3896_v18 }
 0x3fe   : > { %v3839_v19 = vpop.xlane.xlu1 %3838 }
 0x3ff   : > { %3929 = vst.msk [vmem:[%s5618_s23] sm:$0xff] %vm3928_vm2, %v3912_v51 }
 0x400   : > { %v2236_v20 = vpop.xlane.xlu0 %2235 }
 0x401   : > { %v3897_v21 = vadd.f32 %v3839_v19, %v2236_v20 }
 0x403   : > { %v3913_v22 = vmul.f32 0.00390625, %v3897_v21 }
 0x404   : > { %v2240_v23 = vpop.xlane.xlu0 %2239 }
 0x405   : > { %3930 = vst.msk [vmem:[%s5618_s23 + $0x8] sm:$0xff] %vm3928_vm2, %v3913_v22 }
 0x407   : > { %v2244_v24 = vpop.xlane.xlu1 %2243 }
 0x408   : > { %v3843_v25 = vpop.xlane.xlu0 %3842 }
 0x409   : > { %v3898_v26 = vadd.f32 %v3843_v25, %v2240_v23 }
 0x40b   : > { %v3914_v27 = vmul.f32 0.00390625, %v3898_v26  ;;  %v3847_v28 = vpop.xlane.xlu1 %3846 }
 0x40c   : > { %v3899_v1 = vadd.f32 %v3847_v28, %v2244_v24  ;;  %v2248_v3 = vpop.xlane.xlu0 %2247 }
 0x40d   : > { %3931 = vst.msk [vmem:[%s5618_s23 + $0x10] sm:$0xff] %vm3928_vm2, %v3914_v27 }
 0x40e   : > { %v3915_v2 = vmul.f32 0.00390625, %v3899_v1 }
 0x40f   : > { %v2252_v0 = vpop.xlane.xlu1 %2251 }
 0x410   : > { %3932 = vst.msk [vmem:[%s5618_s23 + $0x18] sm:$0xff] %vm3928_vm2, %v3915_v2  ;;  %v3851_v29 = vpop.xlane.xlu0 %3850 }
 0x411   : > { %v3900_v30 = vadd.f32 %v3851_v29, %v2248_v3 }
 0x413   : > { %v3916_v31 = vmul.f32 0.00390625, %v3900_v30  ;;  %v3855_v32 = vpop.xlane.xlu1 %3854 }
 0x414   : > { %v3901_v33 = vadd.f32 %v3855_v32, %v2252_v0  ;;  %v2256_v34 = vpop.xlane.xlu0 %2255 }
 0x415   : > { %3933 = vst.msk [vmem:[%s5618_s23 + $0x20] sm:$0xff] %vm3928_vm2, %v3916_v31 }
 0x416   : > { %v3917_v35 = vmul.f32 0.00390625, %v3901_v33 }
 0x417   : > { %v2260_v36 = vpop.xlane.xlu1 %2259 }
 0x418   : > { %3934 = vst.msk [vmem:[%s5618_s23 + $0x28] sm:$0xff] %vm3928_vm2, %v3917_v35  ;;  %v3859_v37 = vpop.xlane.xlu0 %3858 }
 0x419   : > { %v3902_v38 = vadd.f32 %v3859_v37, %v2256_v34 }
 0x41b   : > { %v3918_v39 = vmul.f32 0.00390625, %v3902_v38  ;;  %v3863_v40 = vpop.xlane.xlu1 %3862 }
 0x41c   : > { %v3903_v5 = vadd.f32 %v3863_v40, %v2260_v36  ;;  %v2264_v6 = vpop.xlane.xlu0 %2263 }
 0x41d   : > { %3935 = vst.msk [vmem:[%s5618_s23 + $0x30] sm:$0xff] %vm3928_vm2, %v3918_v39 }
 0x41e   : > { %v3919_v7 = vmul.f32 0.00390625, %v3903_v5 }
 0x41f   : > { %v2268_v8 = vpop.xlane.xlu1 %2267 }
 0x420   : > { %3936 = vst.msk [vmem:[%s5618_s23 + $0x38] sm:$0xff] %vm3928_vm2, %v3919_v7  ;;  %v3867_v9 = vpop.xlane.xlu0 %3866 }
 0x421   : > { %v3904_v10 = vadd.f32 %v3867_v9, %v2264_v6 }
 0x423   : > { %v3920_v11 = vmul.f32 0.00390625, %v3904_v10  ;;  %v3871_v12 = vpop.xlane.xlu1 %3870 }
 0x424   : > { %v3905_v41 = vadd.f32 %v3871_v12, %v2268_v8  ;;  %v2272_v42 = vpop.xlane.xlu0 %2271 }
 0x425   : > { %3937 = vst.msk [vmem:[%s5618_s23 + $0x40] sm:$0xff] %vm3928_vm2, %v3920_v11 }
 0x426   : > { %v3921_v43 = vmul.f32 0.00390625, %v3905_v41 }
 0x427   : > { %v2276_v44 = vpop.xlane.xlu1 %2275 }
 0x428   : > { %3938 = vst.msk [vmem:[%s5618_s23 + $0x48] sm:$0xff] %vm3928_vm2, %v3921_v43  ;;  %v3875_v45 = vpop.xlane.xlu0 %3874 }
 0x429   : > { %v3906_v46 = vadd.f32 %v3875_v45, %v2272_v42 }
 0x42b   : > { %v3922_v4 = vmul.f32 0.00390625, %v3906_v46  ;;  %v3879_v47 = vpop.xlane.xlu1 %3878 }
 0x42c   : > { %v3907_v49 = vadd.f32 %v3879_v47, %v2276_v44  ;;  %v2280_v50 = vpop.xlane.xlu0 %2279 }
 0x42d   : > { %3939 = vst.msk [vmem:[%s5618_s23 + $0x50] sm:$0xff] %vm3928_vm2, %v3922_v4 }
 0x42e   : > { %v3923_v52 = vmul.f32 0.00390625, %v3907_v49 }
 0x42f   : > { %v2284_v53 = vpop.xlane.xlu1 %2283 }
 0x430   : > { %3940 = vst.msk [vmem:[%s5618_s23 + $0x58] sm:$0xff] %vm3928_vm2, %v3923_v52  ;;  %v3883_v54 = vpop.xlane.xlu0 %3882 }
 0x431   : > { %v3908_v55 = vadd.f32 %v3883_v54, %v2280_v50 }
 0x433   : > { %v3924_v56 = vmul.f32 0.00390625, %v3908_v55  ;;  %v3887_v57 = vpop.xlane.xlu1 %3886 }
 0x434   : > { %v3909_v58 = vadd.f32 %v3887_v57, %v2284_v53  ;;  %v2288_v59 = vpop.xlane.xlu0 %2287 }
 0x435   : > { %3941 = vst.msk [vmem:[%s5618_s23 + $0x60] sm:$0xff] %vm3928_vm2, %v3924_v56 }
 0x436   : > { %v3925_v60 = vmul.f32 0.00390625, %v3909_v58 }
 0x437   : > { %v2292_v61 = vpop.xlane.xlu1 %2291 }
 0x438   : > { %3942 = vst.msk [vmem:[%s5618_s23 + $0x68] sm:$0xff] %vm3928_vm2, %v3925_v60  ;;  %v3891_v62 = vpop.xlane.xlu0 %3890 }
 0x439   : > { %v3910_v63 = vadd.f32 %v3891_v62, %v2288_v59 }
 0x43b   : > { %v3926_v13 = vmul.f32 0.00390625, %v3910_v63  ;;  %v3895_v14 = vpop.xlane.xlu1 %3894 }
 0x43c   : > { %v3911_v15 = vadd.f32 %v3895_v14, %v2292_v61 }
 0x43d   : > { %3943 = vst.msk [vmem:[%s5618_s23 + $0x70] sm:$0xff] %vm3928_vm2, %v3926_v13 }
 0x43e   : > { %v3927_v16 = vmul.f32 0.00390625, %v3911_v15 }
 0x440   : > { %3944 = vst.msk [vmem:[%s5618_s23 + $0x78] sm:$0xff] %vm3928_vm2, %v3927_v16 }
 0x441 PF: > { %s14_s15 = sadd.s32 1, %s4756_s15  }
 0x442   : > { %p11_p4 = scmp.ge.s32.totalorder %s14_s15, 4  }
 0x444   :  { %13 = sbr.rel (!%p11_p4) target bundleno = 1 (0x1), region = 66 }

</bundles_post_ra>
